<compile_context>
chip_gen: v6e
topology: v6e:2x2x1
jax: 0.10.0
libtpu: 0.0.40
codegen_flags: <defaults>
</compile_context>

<pallas_src>
import math

import jax
import jax.numpy as jnp
from jax.experimental import pallas as pl
from jax.experimental.pallas import tpu as pltpu

LN_EPS = 1e-5  # PyTorch nn.LayerNorm default
_INV_SQRT2 = 1.0 / math.sqrt(2.0)


def _layernorm(h, gamma, beta):
    mu = jnp.mean(h, axis=-1, keepdims=True)
    var = jnp.mean(jnp.square(h - mu), axis=-1, keepdims=True)
    return (h - mu) * jax.lax.rsqrt(var + LN_EPS) * gamma + beta


def projector_kernel(x_ref, w1_ref, p_ref, w3_ref, o_ref, h_ref, acc_ref):
    # grid = (row_tiles [parallel], k_tiles [arbitrary, reduction of linear_3])
    k = pl.program_id(1)
    nk, _, tk = h_ref.shape  # static

    # Packed parameter rows (f32): 0=b1, 1=gamma2, 2=beta2, 3=b3, 4=gamma4, 5=beta4.
    @pl.when(k == 0)
    def _():
        # linear_1: bf16 x bf16 -> f32 on the MXU, + bias
        h = jnp.dot(x_ref[...], w1_ref[...], preferred_element_type=jnp.float32)
        h = h + p_ref[0:1, :]
        # linear_2: LayerNorm (f32)
        h = _layernorm(h, p_ref[1:2, :], p_ref[2:3, :])
        # act: exact GELU (erf form, matches nn.GELU() default)
        h = 0.5 * h * (1.0 + jax.lax.erf(h * _INV_SQRT2))
        # stage activations in bf16, pre-split into K slices for the second matmul
        hlo = h.astype(h_ref.dtype)
        for kk in range(nk):  # static unroll, lane-aligned static slices
            h_ref[kk, :, :] = hlo[:, kk * tk:(kk + 1) * tk]
        acc_ref[...] = jnp.zeros_like(acc_ref)

    # linear_3, K-tiled: stream a (tk, d_txt) slice of W3 per step, accumulate in f32
    acc_ref[...] += jnp.dot(h_ref[k], w3_ref[...],
                            preferred_element_type=jnp.float32)

    @pl.when(k == nk - 1)
    def _():
        h2 = acc_ref[...] + p_ref[3:4, :]
        # linear_4: LayerNorm
        h2 = _layernorm(h2, p_ref[4:5, :], p_ref[5:6, :])
        o_ref[...] = h2.astype(o_ref.dtype)


def _pick_tile_rows(rows):
    # Start at 256 (full MXU M on v6e/v7x); shrink so there are >=2 grid steps
    # (v7x megacore), never below 8 sublanes.
    t = 256
    while t > 8 and pl.cdiv(rows, t) < 2:
        t //= 2
    return max(t, 8)


def _pick_tile_k(d_txt):
    for t in (512, 256, 128):
        if d_txt % t == 0:
            return t
    return d_txt  # small / odd hidden sizes: no K-tiling


def llava_projector(image_features, params, *, tile_rows=None, tile_k=None,
                    compute_dtype=jnp.bfloat16, out_dtype=None):
    """image_features: [B, S, D_vis] -> [B, S, D_txt]."""
    B, S, d_vis = image_features.shape
    d_txt = params["w1"].shape[1]
    if out_dtype is None:
        out_dtype = image_features.dtype

    rows = B * S
    if tile_rows is None:
        tile_rows = _pick_tile_rows(rows)
    if tile_k is None:
        tile_k = _pick_tile_k(d_txt)
    assert tile_rows % 8 == 0, "tile_rows must be a multiple of 8 sublanes"
    assert d_txt % tile_k == 0, "d_txt must be divisible by tile_k"
    num_k = d_txt // tile_k

    # Flatten and pad rows to a tile multiple (padded rows are zeros; LN of a zero
    # row is finite, and padded outputs are sliced off below).
    rows_p = pl.cdiv(rows, tile_rows) * tile_rows
    x2d = image_features.reshape(rows, d_vis).astype(compute_dtype)
    if rows_p != rows:
        x2d = jnp.pad(x2d, ((0, rows_p - rows), (0, 0)))

    # bf16 matmul operands (f32 accumulation inside the kernel).
    w1 = params["w1"].astype(compute_dtype)            # (d_vis, d_txt)
    w3 = params["w3"].astype(compute_dtype)            # (d_txt, d_txt)

    # Pack all 1-D params into a single sublane-aligned (8, d_txt) f32 block.
    zeros = jnp.zeros((d_txt,), jnp.float32)
    packed = jnp.stack([
        params["b1"], params["g2"], params["be2"],
        params["b3"], params["g4"], params["be4"],
        zeros, zeros,
    ]).astype(jnp.float32)

    grid = (rows_p // tile_rows, num_k)

    # Size the scoped VMEM budget to the real footprint (double-buffered tiles).
    bpe = jnp.dtype(compute_dtype).itemsize
    obe = jnp.dtype(out_dtype).itemsize
    footprint = (2 * d_vis * d_txt * bpe          # W1 (resident)
                 + 2 * tile_k * d_txt * bpe       # streamed W3 tile
                 + 2 * 8 * d_txt * 4              # packed biases/LN params
                 + 2 * tile_rows * d_vis * bpe    # x tile
                 + 2 * tile_rows * d_txt * obe    # output tile
                 + tile_rows * d_txt * bpe        # staged activations scratch
                 + tile_rows * d_txt * 4)         # f32 accumulator scratch
    vmem_limit = min(max(int(footprint * 1.5) + (2 << 20), 32 << 20), 128 << 20)

    out2d = pl.pallas_call(
        projector_kernel,
        out_shape=jax.ShapeDtypeStruct((rows_p, d_txt), out_dtype),
        grid_spec=pltpu.PrefetchScalarGridSpec(
            num_scalar_prefetch=0,
            grid=grid,
            in_specs=[
                pl.BlockSpec((tile_rows, d_vis), lambda i, k: (i, 0)),  # x rows
                pl.BlockSpec((d_vis, d_txt), lambda i, k: (0, 0)),      # W1 (const)
                pl.BlockSpec((8, d_txt), lambda i, k: (0, 0)),          # packed params
                pl.BlockSpec((tile_k, d_txt), lambda i, k: (k, 0)),     # W3 K-slice
            ],
            out_specs=pl.BlockSpec((tile_rows, d_txt), lambda i, k: (i, 0)),
            scratch_shapes=[
                pltpu.VMEM((num_k, tile_rows, tile_k), compute_dtype),  # staged h
                pltpu.VMEM((tile_rows, d_txt), jnp.float32),            # accumulator
            ],
        ),
        compiler_params=pltpu.CompilerParams(
            dimension_semantics=("parallel", "arbitrary"),
            vmem_limit_bytes=vmem_limit,
        ),
    )(x2d, w1, packed, w3)

    return out2d[:rows].reshape(B, S, d_txt)


def init_params(key, d_vis, d_txt, dtype=jnp.float32):
    """Deterministic synthetic parameters (PyTorch Linear: W is (out,in), y = x@W.T+b)."""
    ks = jax.random.split(key, 8)
    w1_pt = jax.random.normal(ks[0], (d_txt, d_vis), dtype) * 0.02   # linear_1.weight
    b1 = jax.random.normal(ks[1], (d_txt,), dtype) * 0.02            # linear_1.bias
    w3_pt = jax.random.normal(ks[2], (d_txt, d_txt), dtype) * 0.02   # linear_3.weight
    b3 = jax.random.normal(ks[3], (d_txt,), dtype) * 0.02            # linear_3.bias
    # LayerNorm affine params (randomized slightly for a stronger correctness test).
    g2 = 1.0 + 0.1 * jax.random.normal(ks[4], (d_txt,), dtype)
    be2 = 0.1 * jax.random.normal(ks[5], (d_txt,), dtype)
    g4 = 1.0 + 0.1 * jax.random.normal(ks[6], (d_txt,), dtype)
    be4 = 0.1 * jax.random.normal(ks[7], (d_txt,), dtype)
    return {
        "w1": w1_pt.T, "b1": b1,          # (d_vis, d_txt) for x @ W
        "g2": g2, "be2": be2,
        "w3": w3_pt.T, "b3": b3,          # (d_txt, d_txt)
        "g4": g4, "be4": be4,
    }


def reference_forward(x, params, compute_dtype=jnp.bfloat16):
    """Plain-JAX reference with the same bf16 operand rounding as the kernel."""
    r = lambda a: a.astype(compute_dtype).astype(jnp.float32)

    def ln(h, g, b):
        mu = jnp.mean(h, axis=-1, keepdims=True)
        var = jnp.mean((h - mu) ** 2, axis=-1, keepdims=True)
        return (h - mu) / jnp.sqrt(var + LN_EPS) * g + b

    h = r(x) @ r(params["w1"]) + params["b1"]
    h = ln(h, params["g2"], params["be2"])
    h = 0.5 * h * (1.0 + jax.lax.erf(h * _INV_SQRT2))
    h = r(h) @ r(params["w3"]) + params["b3"]
    h = ln(h, params["g4"], params["be4"])
    return h


if __name__ == "__main__":
    # Small config: vision hidden 256, text hidden 256, batch=2, seq=128.
    # Exercises both grid axes: 2 row tiles of 128 and 2 K-tiles of 128 for W3.
    B, S = 2, 128
    D_VIS, D_TXT = 256, 256

    key = jax.random.PRNGKey(0)
    k_x, k_p = jax.random.split(key)
    image_features = jax.random.normal(k_x, (B, S, D_VIS), jnp.float32)
    params = init_params(k_p, D_VIS, D_TXT)

    out = llava_projector(image_features, params, tile_rows=128, tile_k=128)
    out = jax.block_until_ready(out)

    ref = reference_forward(image_features, params)
    assert out.shape == (B, S, D_TXT)
    max_err = float(jnp.max(jnp.abs(out.astype(jnp.float32) - ref)))
    assert max_err < 2e-2, f"mismatch vs reference, max abs err = {max_err}"

    print("KERNEL_OK")
</pallas_src>

<mosaic_0001>
module attributes {stable_mosaic.version = 11 : i64} {
  func.func @projector_kernel(%arg0: i32, %arg1: i32, %arg2: memref<128x256xbf16, #tpu.memory_space<vmem>>, %arg3: memref<256x256xbf16, #tpu.memory_space<vmem>>, %arg4: memref<8x256xf32, #tpu.memory_space<vmem>>, %arg5: memref<128x256xbf16, #tpu.memory_space<vmem>>, %arg6: memref<128x256xf32, #tpu.memory_space<vmem>>, %arg7: memref<2x128x128xbf16, #tpu.memory_space<vmem>>, %arg8: memref<128x256xf32, #tpu.memory_space<vmem>>) attributes {dimension_semantics = [#tpu.dimension_semantics<parallel>, #tpu.dimension_semantics<arbitrary>], iteration_bounds = array<i64: 2, 2>, scalar_prefetch = 0 : i64, scratch_operands = 2 : i64, tpu.core_type = #tpu.core_type<tc>, window_params = [{transform_indices = @transform_0, window_bounds = array<i64: 128, 256>}, {pipeline_mode = #tpu.pipeline_mode<synchronous>, transform_indices = @transform_1, window_bounds = array<i64: 256, 256>}, {pipeline_mode = #tpu.pipeline_mode<synchronous>, transform_indices = @transform_2, window_bounds = array<i64: 8, 256>}, {transform_indices = @transform_3, window_bounds = array<i64: 128, 256>}, {transform_indices = @transform_4, window_bounds = array<i64: 128, 256>}]} {
    %c0_i32 = arith.constant 0 : i32
    %0 = arith.cmpi eq, %arg1, %c0_i32 : i32
    %1 = arith.extui %0 : i1 to i32
    %c0_i32_0 = arith.constant 0 : i32
    %2 = arith.cmpi ne, %1, %c0_i32_0 : i32
    scf.if %2 {
      %c0_9 = arith.constant 0 : index
      %c0_10 = arith.constant 0 : index
      %14 = vector.load %arg2[%c0_9, %c0_10] : memref<128x256xbf16, #tpu.memory_space<vmem>>, vector<128x256xbf16>
      %c0_11 = arith.constant 0 : index
      %c0_12 = arith.constant 0 : index
      %15 = vector.load %arg3[%c0_11, %c0_12] : memref<256x256xbf16, #tpu.memory_space<vmem>>, vector<256x256xbf16>
      %cst_13 = arith.constant dense<0.000000e+00> : vector<128x256xf32>
      %16 = tpu.matmul %14, %15, %cst_13 {dimension_numbers = #tpu.dot_dimension_numbers<[1], [0], [0], [1], [0, 0, 1, 1], [], []>} : vector<128x256xbf16>, vector<256x256xbf16>, vector<128x256xf32> -> vector<128x256xf32>
      %c0_14 = arith.constant 0 : index
      %c0_15 = arith.constant 0 : index
      %17 = vector.load %arg4[%c0_14, %c0_15] : memref<8x256xf32, #tpu.memory_space<vmem>>, vector<1x256xf32>
      %18 = vector.broadcast %17 : vector<1x256xf32> to vector<128x256xf32>
      %19 = arith.addf %16, %18 : vector<128x256xf32>
      %c1 = arith.constant 1 : index
      %c0_16 = arith.constant 0 : index
      %20 = vector.load %arg4[%c1, %c0_16] : memref<8x256xf32, #tpu.memory_space<vmem>>, vector<1x256xf32>
      %c2 = arith.constant 2 : index
      %c0_17 = arith.constant 0 : index
      %21 = vector.load %arg4[%c2, %c0_17] : memref<8x256xf32, #tpu.memory_space<vmem>>, vector<1x256xf32>
      %cst_18 = arith.constant dense<0.000000e+00> : vector<128xf32>
      %22 = vector.multi_reduction <add>, %19, %cst_18 [1] : vector<128x256xf32> to vector<128xf32>
      %23 = vector.shape_cast %22 : vector<128xf32> to vector<128x1xf32>
      %cst_19 = arith.constant 2.560000e+02 : f32
      %24 = vector.broadcast %cst_19 : f32 to vector<128x1xf32>
      %25 = arith.divf %23, %24 : vector<128x1xf32>
      %26 = vector.broadcast %25 : vector<128x1xf32> to vector<128x256xf32>
      %27 = arith.subf %19, %26 : vector<128x256xf32>
      %28 = arith.mulf %27, %27 : vector<128x256xf32>
      %cst_20 = arith.constant dense<0.000000e+00> : vector<128xf32>
      %29 = vector.multi_reduction <add>, %28, %cst_20 [1] : vector<128x256xf32> to vector<128xf32>
      %30 = vector.shape_cast %29 : vector<128xf32> to vector<128x1xf32>
      %cst_21 = arith.constant 2.560000e+02 : f32
      %31 = vector.broadcast %cst_21 : f32 to vector<128x1xf32>
      %32 = arith.divf %30, %31 : vector<128x1xf32>
      %33 = vector.broadcast %25 : vector<128x1xf32> to vector<128x256xf32>
      %34 = arith.subf %19, %33 : vector<128x256xf32>
      %cst_22 = arith.constant 9.99999974E-6 : f32
      %35 = vector.broadcast %cst_22 : f32 to vector<128x1xf32>
      %36 = arith.addf %32, %35 : vector<128x1xf32>
      %37 = math.rsqrt %36 : vector<128x1xf32>
      %38 = vector.broadcast %37 : vector<128x1xf32> to vector<128x256xf32>
      %39 = arith.mulf %34, %38 : vector<128x256xf32>
      %40 = vector.broadcast %20 : vector<1x256xf32> to vector<128x256xf32>
      %41 = arith.mulf %39, %40 : vector<128x256xf32>
      %42 = vector.broadcast %21 : vector<1x256xf32> to vector<128x256xf32>
      %43 = arith.addf %41, %42 : vector<128x256xf32>
      %cst_23 = arith.constant 5.000000e-01 : f32
      %44 = vector.broadcast %cst_23 : f32 to vector<128x256xf32>
      %45 = arith.mulf %44, %43 : vector<128x256xf32>
      %cst_24 = arith.constant 0.707106769 : f32
      %46 = vector.broadcast %cst_24 : f32 to vector<128x256xf32>
      %47 = arith.mulf %43, %46 : vector<128x256xf32>
      %48 = math.erf %47 : vector<128x256xf32>
      %cst_25 = arith.constant 1.000000e+00 : f32
      %49 = vector.broadcast %cst_25 : f32 to vector<128x256xf32>
      %50 = arith.addf %49, %48 : vector<128x256xf32>
      %51 = arith.mulf %45, %50 : vector<128x256xf32>
      %52 = arith.truncf %51 : vector<128x256xf32> to vector<128x256xbf16>
      %53 = vector.extract_strided_slice %52 {offsets = [0, 0], sizes = [128, 128], strides = [1, 1]} : vector<128x256xbf16> to vector<128x128xbf16>
      %c0_26 = arith.constant 0 : index
      %c0_27 = arith.constant 0 : index
      %c0_28 = arith.constant 0 : index
      %54 = vector.load %arg7[%c0_26, %c0_27, %c0_28] : memref<2x128x128xbf16, #tpu.memory_space<vmem>>, vector<1x128x128xbf16>
      %55 = vector.shape_cast %54 : vector<1x128x128xbf16> to vector<128x128xbf16>
      %56 = vector.shape_cast %53 : vector<128x128xbf16> to vector<1x128x128xbf16>
      tpu.vector_store %arg7[%c0_26, %c0_27, %c0_28], %56 {strides = array<i32>} : memref<2x128x128xbf16, #tpu.memory_space<vmem>>, vector<1x128x128xbf16>,
      %57 = vector.extract_strided_slice %52 {offsets = [0, 128], sizes = [128, 128], strides = [1, 1]} : vector<128x256xbf16> to vector<128x128xbf16>
      %c1_29 = arith.constant 1 : index
      %c0_30 = arith.constant 0 : index
      %c0_31 = arith.constant 0 : index
      %58 = vector.load %arg7[%c1_29, %c0_30, %c0_31] : memref<2x128x128xbf16, #tpu.memory_space<vmem>>, vector<1x128x128xbf16>
      %59 = vector.shape_cast %58 : vector<1x128x128xbf16> to vector<128x128xbf16>
      %60 = vector.shape_cast %57 : vector<128x128xbf16> to vector<1x128x128xbf16>
      tpu.vector_store %arg7[%c1_29, %c0_30, %c0_31], %60 {strides = array<i32>} : memref<2x128x128xbf16, #tpu.memory_space<vmem>>, vector<1x128x128xbf16>,
      %cst_32 = arith.constant 0.000000e+00 : f32
      %61 = vector.broadcast %cst_32 : f32 to vector<128x256xf32>
      %c0_33 = arith.constant 0 : index
      %c0_34 = arith.constant 0 : index
      %62 = vector.load %arg8[%c0_33, %c0_34] : memref<128x256xf32, #tpu.memory_space<vmem>>, vector<128x256xf32>
      tpu.vector_store %arg8[%c0_33, %c0_34], %61 {strides = array<i32>} : memref<128x256xf32, #tpu.memory_space<vmem>>, vector<128x256xf32>,
    } else {
    }
    %c0 = arith.constant 0 : index
    %c0_1 = arith.constant 0 : index
    %3 = vector.load %arg8[%c0, %c0_1] : memref<128x256xf32, #tpu.memory_space<vmem>>, vector<128x256xf32>
    %4 = arith.index_cast %arg1 : i32 to index
    %c0_2 = arith.constant 0 : index
    %c0_3 = arith.constant 0 : index
    %5 = vector.load %arg7[%4, %c0_2, %c0_3] : memref<2x128x128xbf16, #tpu.memory_space<vmem>>, vector<1x128x128xbf16>
    %6 = vector.shape_cast %5 : vector<1x128x128xbf16> to vector<128x128xbf16>
    %c0_4 = arith.constant 0 : index
    %c0_5 = arith.constant 0 : index
    %7 = vector.load %arg5[%c0_4, %c0_5] : memref<128x256xbf16, #tpu.memory_space<vmem>>, vector<128x256xbf16>
    %cst = arith.constant dense<0.000000e+00> : vector<128x256xf32>
    %8 = tpu.matmul %6, %7, %cst {dimension_numbers = #tpu.dot_dimension_numbers<[1], [0], [0], [1], [0, 0, 1, 1], [], []>} : vector<128x128xbf16>, vector<128x256xbf16>, vector<128x256xf32> -> vector<128x256xf32>
    %9 = arith.addf %3, %8 : vector<128x256xf32>
    %c0_6 = arith.constant 0 : index
    %c0_7 = arith.constant 0 : index
    %10 = vector.load %arg8[%c0_6, %c0_7] : memref<128x256xf32, #tpu.memory_space<vmem>>, vector<128x256xf32>
    tpu.vector_store %arg8[%c0_6, %c0_7], %9 {strides = array<i32>} : memref<128x256xf32, #tpu.memory_space<vmem>>, vector<128x256xf32>,
    %c1_i32 = arith.constant 1 : i32
    %11 = arith.cmpi eq, %arg1, %c1_i32 : i32
    %12 = arith.extui %11 : i1 to i32
    %c0_i32_8 = arith.constant 0 : i32
    %13 = arith.cmpi ne, %12, %c0_i32_8 : i32
    scf.if %13 {
      %c0_9 = arith.constant 0 : index
      %c0_10 = arith.constant 0 : index
      %14 = vector.load %arg8[%c0_9, %c0_10] : memref<128x256xf32, #tpu.memory_space<vmem>>, vector<128x256xf32>
      %c3 = arith.constant 3 : index
      %c0_11 = arith.constant 0 : index
      %15 = vector.load %arg4[%c3, %c0_11] : memref<8x256xf32, #tpu.memory_space<vmem>>, vector<1x256xf32>
      %16 = vector.broadcast %15 : vector<1x256xf32> to vector<128x256xf32>
      %17 = arith.addf %14, %16 : vector<128x256xf32>
      %c4 = arith.constant 4 : index
      %c0_12 = arith.constant 0 : index
      %18 = vector.load %arg4[%c4, %c0_12] : memref<8x256xf32, #tpu.memory_space<vmem>>, vector<1x256xf32>
      %c5 = arith.constant 5 : index
      %c0_13 = arith.constant 0 : index
      %19 = vector.load %arg4[%c5, %c0_13] : memref<8x256xf32, #tpu.memory_space<vmem>>, vector<1x256xf32>
      %cst_14 = arith.constant dense<0.000000e+00> : vector<128xf32>
      %20 = vector.multi_reduction <add>, %17, %cst_14 [1] : vector<128x256xf32> to vector<128xf32>
      %21 = vector.shape_cast %20 : vector<128xf32> to vector<128x1xf32>
      %cst_15 = arith.constant 2.560000e+02 : f32
      %22 = vector.broadcast %cst_15 : f32 to vector<128x1xf32>
      %23 = arith.divf %21, %22 : vector<128x1xf32>
      %24 = vector.broadcast %23 : vector<128x1xf32> to vector<128x256xf32>
      %25 = arith.subf %17, %24 : vector<128x256xf32>
      %26 = arith.mulf %25, %25 : vector<128x256xf32>
      %cst_16 = arith.constant dense<0.000000e+00> : vector<128xf32>
      %27 = vector.multi_reduction <add>, %26, %cst_16 [1] : vector<128x256xf32> to vector<128xf32>
      %28 = vector.shape_cast %27 : vector<128xf32> to vector<128x1xf32>
      %cst_17 = arith.constant 2.560000e+02 : f32
      %29 = vector.broadcast %cst_17 : f32 to vector<128x1xf32>
      %30 = arith.divf %28, %29 : vector<128x1xf32>
      %31 = vector.broadcast %23 : vector<128x1xf32> to vector<128x256xf32>
      %32 = arith.subf %17, %31 : vector<128x256xf32>
      %cst_18 = arith.constant 9.99999974E-6 : f32
      %33 = vector.broadcast %cst_18 : f32 to vector<128x1xf32>
      %34 = arith.addf %30, %33 : vector<128x1xf32>
      %35 = math.rsqrt %34 : vector<128x1xf32>
      %36 = vector.broadcast %35 : vector<128x1xf32> to vector<128x256xf32>
      %37 = arith.mulf %32, %36 : vector<128x256xf32>
      %38 = vector.broadcast %18 : vector<1x256xf32> to vector<128x256xf32>
      %39 = arith.mulf %37, %38 : vector<128x256xf32>
      %40 = vector.broadcast %19 : vector<1x256xf32> to vector<128x256xf32>
      %41 = arith.addf %39, %40 : vector<128x256xf32>
      %c0_19 = arith.constant 0 : index
      %c0_20 = arith.constant 0 : index
      %42 = vector.load %arg6[%c0_19, %c0_20] : memref<128x256xf32, #tpu.memory_space<vmem>>, vector<128x256xf32>
      tpu.vector_store %arg6[%c0_19, %c0_20], %41 {strides = array<i32>} : memref<128x256xf32, #tpu.memory_space<vmem>>, vector<128x256xf32>,
    } else {
    }
    return
  }
  func.func @transform_0(%arg0: i32, %arg1: i32) -> (i32, i32) {
    %c0_i32 = arith.constant 0 : i32
    %c0_i32_0 = arith.constant 0 : i32
    return %arg0, %c0_i32 : i32, i32
  }
  func.func @transform_1(%arg0: i32, %arg1: i32) -> (i32, i32) {
    %c0_i32 = arith.constant 0 : i32
    %c0_i32_0 = arith.constant 0 : i32
    %c0_i32_1 = arith.constant 0 : i32
    return %c0_i32, %c0_i32_0 : i32, i32
  }
  func.func @transform_2(%arg0: i32, %arg1: i32) -> (i32, i32) {
    %c0_i32 = arith.constant 0 : i32
    %c0_i32_0 = arith.constant 0 : i32
    %c0_i32_1 = arith.constant 0 : i32
    return %c0_i32, %c0_i32_0 : i32, i32
  }
  func.func @transform_3(%arg0: i32, %arg1: i32) -> (i32, i32) {
    %c0_i32 = arith.constant 0 : i32
    %c0_i32_0 = arith.constant 0 : i32
    return %arg1, %c0_i32 : i32, i32
  }
  func.func @transform_4(%arg0: i32, %arg1: i32) -> (i32, i32) {
    %c0_i32 = arith.constant 0 : i32
    %c0_i32_0 = arith.constant 0 : i32
    return %arg0, %c0_i32 : i32, i32
  }
}

</mosaic_0001>

<bundles_post_ra>
// kernel: tpu_custom_call.1
= control target key start
LH: loop header
LB: loop body
LE: loop exit
PB: predicated region body
PF: predicated region fallthrough
CT: control target
= control target key end

     0   :  { %s4662_s0 = inlined_call_operand.hbm [shape: bf16[256,256], index: 0, kind: input, shape index: {}]   ;;  %s4663_s1 = inlined_call_operand.hbm [shape: bf16[256,256], index: 1, kind: input, shape index: {}]   ;;  %s4664_s2 = inlined_call_operand.hbm [shape: f32[8,256], index: 2, kind: input, shape index: {}]   ;;  %s4665_s3 = inlined_call_operand.hbm [shape: bf16[256,256], index: 3, kind: input, shape index: {}]   ;;  %s4666_s4 = inlined_call_operand.hbm [shape: f32[256,256], index: 4, kind: output, shape index: {}]  }
   0x1   :  { %4680 = sst [smem:[#allocation22_spill]] %s4662_s0 }
   0x2   :  { %4681 = sst [smem:[#allocation23_spill]] %s4663_s1 }
   0x3   :  { %4682 = sst [smem:[#allocation24_spill]] %s4664_s2 }
   0x4   :  { %4683 = sst [smem:[#allocation25_spill]] %s4666_s4 }
   0x5   :  { %9 = vsyncpa [#allocation5], 0 }
   0x6   :  { %11 = vsyncpa [#allocation5 + $0x1], 0 }
   0x7   :  { %12 = vsyncpa [#allocation8], 0 }
   0x8   :  { %13 = vsyncpa [#allocation11], 0 }
   0x9   :  { %15 = vsyncpa [#allocation11 + $0x1], 0 }
   0xa   :  { %16 = vsyncpa [#allocation6], 0 }
   0xb   :  { %18 = vsyncpa [#allocation6 + $0x1], 0  ;;  %s3348_s15 = smov 0   ;;  %s3350_s16 = smov 0  }
   0xc   :  { %s3352_s17 = smov 0   ;;  %s3354_s18 = smov 0  }
   0xd   :  { %s3356_s19 = smov 0   ;;  %s3358_s20 = smov 0  }
   0xe   :  { %s3360_s21 = smov 0   ;;  %s3362_s22 = smov 0  }
   0xf   :  { %s3364_s23 = smov 0   ;;  %s3366_s24 = smov 0  }
  0x10   :  { %s3368_s25 = smov 0  }
  0x11 LB: > { %4684 = sst [smem:[#allocation17_spill]] %s3282_s18  ;;  %s2393_s26 = sadd.s32 4294967295, %s3310_s25   ;;  %s3310_s25 = sphi %s3368_s25, %s24_s25   ;;  %s3306_s24 = sphi %s3366_s24, %s4726_s24   ;;  %s3302_s23 = sphi %s3364_s23, %s4725_s23   ;;  %s3298_s22 = sphi %s3362_s22, %s4724_s22   ;;  %s3294_s21 = sphi %s3360_s21, %s4723_s21   ;;  %s3290_s20 = sphi %s3358_s20, %s4722_s20   ;;  %s3286_s19 = sphi %s3356_s19, %s4721_s19   ;;  %s3282_s18 = sphi %s3354_s18, %s4720_s18   ;;  %s3278_s17 = sphi %s3352_s17, %s4719_s17   ;;  %s3274_s16 = sphi %s3350_s16, %s4718_s16   ;;  %s3270_s15 = sphi %s3348_s15, %s4717_s15  }
  0x12   : > { %4685 = sst [smem:[#allocation18_spill]] %s3298_s22  ;;  %s2394_s27 = sadd.s32 4294967294, %s3310_s25  }
  0x13   : > { %p56_p0 = scmp.ne.s32.totalorder %s3286_s19, %s3282_s18  ;;  %p3405_p1 = scmp.eq.s32.totalorder %s2393_s26, 0 }
  0x14   : > { %p124_p2 = scmp.ne.s32.totalorder %s3274_s16, %s3270_s15  ;;  %p3410_p3 = scmp.eq.s32.totalorder %s2393_s26, 3 }
  0x15   : > { %p3416_p4 = por %p3405_p1, %p56_p0  ;;  %p154_p5 = scmp.eq.s32.totalorder %s2394_s27, 3 }
  0x16   : > { %p3422_p6 = por %p124_p2, %p3405_p1  ;;  %p2395_p7 = scmp.ge.s32.totalorder %s3310_s25, 1 }
  0x17   : > { %p3427_p8 = por %p154_p5, %p56_p0  ;;  %p161_p9 = scmp.lt.s32.totalorder %s3310_s25, 5 }
  0x18   : > { %s4689_s5 = scalar_select %p3422_p6, 1, 0 }
  0x19   : > { %s4690_s6 = scalar_select %p3427_p8, 1, 0 }
  0x1a   : > { %p3432_p10 = pnand %p2395_p7, %p161_p9  ;;  %s3312_s8 = smov [#allocation7]  }
  0x1b   : > { %4691 = sst [smem:[#allocation19_spill]] %s4690_s6  ;;  %s173_s9 = sshll.u32 %s3312_s8, 4  ;;  %s174_s9 = int_to_ptr.vmem [resolvable:$true] %s173_s9 }
  0x1c   : > { %p2722_p11 = pneg %p3432_p10  ;;  %s3313_s11 = smov [#allocation9]  }
  0x1d   : > { %s187_s12 = sshll.u32 %s3313_s11, 4  ;;  %s3085_s13 = scalar_lea.vmem %s174_s9, 4096  ;;  %s188_s12 = int_to_ptr.vmem [resolvable:$true] %s187_s12 }
  0x1e   : > { %p3440_p12 = pnand %p2722_p11, %p3405_p1  ;;  %p3086_p0 = scmp.ne.s32.totalorder %s174_s9, %s3085_s13 }
  0x1f   : > { %p3093_p7 = scmp.lt.s32.totalorder %s174_s9, %s174_s9  ;;  %p3094_p9 = scmp.lt.s32.totalorder %s3085_s13, %s3085_s13 }
  0x20   : > { %p3076_p13 = pneg %p3440_p12 }
  0x21   : > { %p3095_p8 = por %p3094_p9, %p3093_p7 }
  0x22   : > { %p3088_p2 = pnand %p3086_p0, %p3076_p13 }
  0x24   : > { %p3089_p5 = pneg %p3088_p2 }
  0x26   : > { %p3096_p11 = pnand %p3095_p8, %p3089_p5 }
  0x28   : > { %3099 = shalt.err (!%p3096_p11)
}
  0x29   : > { %s4667_s14 = smov 128   ;;  %s4669_s15 = smov 8  }
  0x2a   : > { %s4694_s1 = sld [smem:[#allocation23_spill]]  ;;  %s3111_s8 = scalar_lea.vmem %s188_s12, 256 }
  0x2b   : > { %p3112_p0 = scmp.ne.s32.totalorder %s188_s12, %s3111_s8  ;;  %p3119_p8 = scmp.lt.s32.totalorder %s188_s12, %s188_s12 }
  0x2c   : > { %p3120_p5 = scmp.lt.s32.totalorder %s3111_s8, %s3111_s8 }
  0x2d   : > { %p3114_p2 = pnand %p3112_p0, %p3076_p13 }
  0x2e   : > { %p3121_p9 = por %p3120_p5, %p3119_p8 }
  0x2f   : > { %p3115_p7 = pneg %p3114_p2 }
  0x30   : > { %2725 = dma.hbm_to_vmem [thread:$0]  (!%p3440_p12), %s4694_s1, 4096, %s174_s9, [#allocation8], %s4667_s14, %s4667_s14, %s4669_s15  }
  0x31   : > { %p3122_p11 = pnand %p3121_p9, %p3115_p7 }
  0x33   : > { %3125 = shalt.err (!%p3122_p11)
}
  0x34   : > { %s4695_s2 = sld [smem:[#allocation24_spill]]  ;;  %p50_p13 = scmp.ne.s32.totalorder %s3290_s20, %s3286_s19 }
  0x35   : > { %p4672_p0 = scmp.eq.s32.totalorder %s3310_s25, 0  ;;  %p2742_p2 = scmp.lt.s32.totalorder %s3310_s25, 4 }
  0x36   : > { %s198_s10 = sand.u32 1, %s3290_s20   ;;  %p3476_p8 = por %p3410_p3, %p50_p13 }
  0x37   : > { %p52_p7 = por %p4672_p0, %p50_p13  ;;  %s2399_s8 = sshll.u32 %s198_s10, 7 }
  0x38   : > { %s4696_s27 = scalar_select %p3476_p8, 1, 0 }
  0x39   : > { %s2528_s11 = sshll.u32 %s3306_s24, 11  ;;  %s4698_s0 = sld [smem:[#allocation22_spill]] }
  0x3a   : > { %2728 = dma.hbm_to_vmem [thread:$0]  (!%p3440_p12), %s4695_s2, 256, %s188_s12, [#allocation8]  }
  0x3b   : > { %4697 = sst [smem:[#allocation20_spill]] %s4696_s27  ;;  %s202_s12 = scalar_lea.vmem [#allocation4], %s2399_s8 }
  0x3c   : > { %s210_s9 = sshll.u32 %s202_s12, 4  ;;  %p3486_p12 = pnand %p2742_p2, %p52_p7  ;;  %s211_s9 = int_to_ptr.vmem [resolvable:$true] %s210_s9 }
  0x3d   : > { %s199_s29 = scalar_lea.sflag [#allocation5], %s198_s10  ;;  %s3139_s1 = scalar_lea.vmem %s211_s9, 2048 }
  0x3e   : > { %p3128_p3 = pneg %p3486_p12  ;;  %p3140_p5 = scmp.ne.s32.totalorder %s211_s9, %s3139_s1 }
  0x3f   : > { %s209_s15 = scalar_lea.hbm %s4698_s0, %s2528_s11  ;;  %s3316_s2 = smov [#allocation4]  }
  0x40   : > { %p3142_p9 = pnand %p3140_p5, %p3128_p3  ;;  %s3144_s6 = sshll.u32 %s3316_s2, 4  ;;  %s3145_s6 = int_to_ptr.vmem [resolvable:$false] %s3144_s6 }
  0x41   : > { %s3146_s14 = scalar_lea.vmem %s3145_s6, 4096  ;;  %p3147_p13 = scmp.lt.s32.totalorder %s211_s9, %s3145_s6 }
  0x42   : > { %p3143_p11 = pneg %p3142_p9  ;;  %p3148_p0 = scmp.lt.s32.totalorder %s3146_s14, %s3139_s1 }
  0x44   : > { %p3149_p8 = por %p3148_p0, %p3147_p13 }
  0x46   : > { %p3150_p6 = pnand %p3149_p8, %p3143_p11 }
  0x48   : > { %3153 = shalt.err (!%p3150_p6)
}
  0x49   : > { %s4700_s8 = smov 8   ;;  %s4701_s11 = smov 128  }
  0x4a   : > { %2732 = dma.hbm_to_vmem [thread:$0]  (!%p3486_p12), %s209_s15, 2048, %s211_s9, %s199_s29, %s4701_s11, %s4701_s11, %s4700_s8  }
  0x4b   : > { %s33_s1 = sadd.s32 1, %s3302_s23  ;;  %s111_s2 = sadd.s32 1, %s3278_s17 }
  0x4c   : > { %p34_p6 = scmp.ge.s32.totalorder %s33_s1, 2  ;;  %p118_p0 = scmp.ne.s32.totalorder %s3278_s17, %s3274_s16 }
  0x4d   : > { %s220_s6 = sand.u32 1, %s3278_s17   ;;  %s4703_s26 = sadd.s32 1, %s3306_s24 }
  0x4e   : > { %s4728_s1 = smov (%p34_p6, %s33_s1), 0  ;;  %s4730_s26 = smov (!%p34_p6, %s4703_s26), %s3306_s24 }
  0x4f   : > { %4702 = sst [smem:[#allocation21_spill]] %s4728_s1  ;;  %s108_s10 = ssub.s32 %s3302_s23, %s4728_s1 }
  0x50   : > { %p4704_p7 = scmp.eq.s32.totalorder %s3310_s25, 0  ;;  %p38_p12 = scmp.ge.s32.totalorder %s4730_s26, 2 }
  0x51   : > { %p109_p3 = scmp.eq.s32.totalorder %s108_s10, 0  ;;  %s2403_s15 = sshll.u32 %s220_s6, 7 }
  0x52   : > { %p3511_p8 = por %p118_p0, %p4704_p7  ;;  %s4732_s26 = smov (%p38_p12, %s4730_s26), 0 }
  0x53   : > { %s3518_s9 = scalar_select %p109_p3, %s3278_s17, %s111_s2  }
  0x54   : > { %s40_s12 = ssub.s32 %s3306_s24, %s4732_s26  ;;  %s2530_s29 = sshll.u32 %s3302_s23, 11 }
  0x55   : > { %p41_p5 = scmp.eq.s32.totalorder %s40_s12, 0  ;;  %s231_s1 = scalar_lea.hbm %s4665_s3, %s2530_s29 }
  0x56   : > { %s224_s18 = scalar_lea.vmem [#allocation10], %s2403_s15  ;;  %s4706_s27 = sadd.s32 1, %s3290_s20 }
  0x57   : > { %s232_s4 = sshll.u32 %s224_s18, 4  ;;  %p3535_p9 = pnand %p2742_p2, %p3511_p8  ;;  %s233_s4 = int_to_ptr.vmem [resolvable:$true] %s232_s4 }
  0x58   : > { %s3529_s22 = scalar_select %p41_p5, %s3290_s20, %s4706_s27  }
  0x59   : > { %s221_s2 = scalar_lea.sflag [#allocation11], %s220_s6  ;;  %p3156_p11 = pneg %p3535_p9 }
  0x5a   : > { %s3167_s12 = scalar_lea.vmem %s233_s4, 2048  ;;  %s3317_s0 = smov [#allocation10]  }
  0x5b   : > { %p3168_p13 = scmp.ne.s32.totalorder %s233_s4, %s3167_s12  ;;  %s3172_s18 = sshll.u32 %s3317_s0, 4  ;;  %s3173_s18 = int_to_ptr.vmem [resolvable:$false] %s3172_s18 }
  0x5c   : > { %s3174_s27 = scalar_lea.vmem %s3173_s18, 4096  ;;  %p3175_p7 = scmp.lt.s32.totalorder %s233_s4, %s3173_s18 }
  0x5d   : > { %p3170_p6 = pnand %p3168_p13, %p3156_p11  ;;  %p3176_p12 = scmp.lt.s32.totalorder %s3174_s27, %s3167_s12 }
  0x5f   : > { %p3171_p0 = pneg %p3170_p6  ;;  %p3177_p3 = por %p3176_p12, %p3175_p7 }
  0x61   : > { %p3178_p5 = pnand %p3177_p3, %p3171_p0 }
  0x63   : > { %3181 = shalt.err (!%p3178_p5)
}
  0x64   : > { %2735 = dma.hbm_to_vmem [thread:$0]  (!%p3535_p9), %s231_s1, 2048, %s233_s4, %s221_s2, %s4701_s11, %s4701_s11, %s4700_s8  }
  0x65   : > { %244 = sbr.rel (%p3432_p10) target bundleno = 1428 (0x594), region = 36  ;;  %s3549_s6 = sand.u32 (!%p3432_p10), 1, %s3286_s19  }
  0x66   : > { %s2408_s13 = sshll.u32 (!%p3432_p10), %s3549_s6, 7  ;;  %s247_s15 = scalar_lea.sflag (!%p3432_p10), [#allocation5], %s3549_s6 }
  0x67   : > { %s3553_s29 = scalar_lea.vmem (!%p3432_p10), [#allocation4], %s2408_s13 }
  0x6a   : > { %3253 = dma.done.wait (%p3416_p4), %s247_s15, 2048  }
  0x6b   : > { %3255 = vsyncadd (%p3416_p4), %s247_s15, 4294965248 }
  0x6c   : > { %3257 = dma.done.wait (%p3405_p1), [#allocation8], 4352  }
  0x6d   : > { %3259 = vsyncadd (%p3405_p1), [#allocation8], 4294962944  ;;  %s263_s4 = sand.u32 1, %s3274_s16   ;;  %p4708_p10 = scmp.ne.s32.totalorder %s4689_s5, 0 }
  0x6e   : > { %s2411_s7 = sshll.u32 %s263_s4, 7  ;;  %s264_s8 = scalar_lea.sflag [#allocation11], %s263_s4 }
  0x6f   : > { %s3564_s11 = scalar_lea.vmem [#allocation10], %s2411_s7 }
  0x70   : > { %3261 = dma.done.wait (%p4708_p10), %s264_s8, 2048  }
  0x71   : > { %3263 = vsyncadd (%p4708_p10), %s264_s8, 4294965248  ;;  %s2412_s30 = sshll.u32 %s3549_s6, 8  ;;  %p2413_p4 = scmp.ne.s32.totalorder %s3294_s21, 0 }
  0x72   : > { %s3571_s1 = scalar_lea.vmem [#allocation12], %s2412_s30 }
  0x73   : > { %304 = sbr.rel (%p2413_p4) target bundleno = 780 (0x30c), region = 56 }
  0x78   : > { %v2842_v0 = vld [vmem:[#allocation7 + $0x74] ss:$8 sps:$4 sm:$0xff]   ;;  %v2844_v1 = vld [vmem:[#allocation7 + $0x70] ss:$8 sps:$4 sm:$0xff]   ;;  %v2845_v2 = vld [vmem:[#allocation7 + $0x64] ss:$8 sps:$4 sm:$0xff]   ;;  %v355_v48 = vlaneseq }
  0x79   : > { %605 = vmatprep.subr.bf16.mxu0 %v2842_v0  ;;  %2660 = vmatprep.subr.bf16.mxu1 %v2842_v0  ;;  %v2847_v3 = vld [vmem:[#allocation7 + $0x60] ss:$8 sps:$4 sm:$0xff]   ;;  %v2848_v4 = vld [vmem:[#allocation7 + $0x54] ss:$8 sps:$4 sm:$0xff]   ;;  %v2850_v5 = vld [vmem:[#allocation7 + $0x50] ss:$8 sps:$4 sm:$0xff]  }
  0x7a   : > { %606 = vmatpush1.bf16.msra.mxu0 %v2844_v1  ;;  %2676 = vmatpush1.bf16.msra.mxu1 %v2844_v1  ;;  %v2851_v6 = vld [vmem:[#allocation7 + $0x44] ss:$8 sps:$4 sm:$0xff]   ;;  %v2853_v7 = vld [vmem:[#allocation7 + $0x40] ss:$8 sps:$4 sm:$0xff]   ;;  %v2854_v8 = vld [vmem:[#allocation7 + $0x34] ss:$8 sps:$4 sm:$0xff]  }
  0x7b   : > { %607 = vmatprep.subr.bf16.mxu0 %v2845_v2  ;;  %2661 = vmatprep.subr.bf16.mxu1 %v2845_v2  ;;  %v2856_v9 = vld [vmem:[#allocation7 + $0x30] ss:$8 sps:$4 sm:$0xff]   ;;  %v2857_v10 = vld [vmem:[#allocation7 + $0x24] ss:$8 sps:$4 sm:$0xff]   ;;  %v2859_v11 = vld [vmem:[#allocation7 + $0x20] ss:$8 sps:$4 sm:$0xff]  }
  0x7c   : > { %v2860_v12 = vld [vmem:[#allocation7 + $0x14] ss:$8 sps:$4 sm:$0xff]   ;;  %v2892_v13 = vld [vmem:[%s3553_s29 + $0x4] ss:$8 sps:$4 sm:$0xff]   ;;  %v2862_v14 = vld [vmem:[#allocation7 + $0x10] ss:$8 sps:$4 sm:$0xff]  }
  0x7d   : > { %v2895_v15 = vld [vmem:[%s3553_s29 + $0x44] ss:$8 sps:$4 sm:$0xff]   ;;  %637 = vmatprep.mubr.bf16.mxu0 %v2892_v13  ;;  %v2865_v17 = vld [vmem:[#allocation7] ss:$8 sps:$4 sm:$0xff]   ;;  %v2866_v18 = vld [vmem:[#allocation7 + $0xf4] ss:$8 sps:$4 sm:$0xff]  }
  0x7e   : > { %608 = vmatpush1.bf16.msra.mxu0 %v2847_v3  ;;  %2677 = vmatpush1.bf16.msra.mxu1 %v2847_v3  ;;  %v2863_v16 = vld [vmem:[#allocation7 + $0x4] ss:$8 sps:$4 sm:$0xff]   ;;  %v2868_v19 = vld [vmem:[#allocation7 + $0xf0] ss:$8 sps:$4 sm:$0xff]   ;;  %v2871_v21 = vld [vmem:[#allocation7 + $0xe0] ss:$8 sps:$4 sm:$0xff]  }
  0x7f   : > { %609 = vmatprep.subr.bf16.mxu0 %v2848_v4  ;;  %2662 = vmatprep.subr.bf16.mxu1 %v2848_v4  ;;  %v2869_v20 = vld [vmem:[#allocation7 + $0xe4] ss:$8 sps:$4 sm:$0xff]   ;;  %v2872_v22 = vld [vmem:[#allocation7 + $0xd4] ss:$8 sps:$4 sm:$0xff]   ;;  %v2874_v23 = vld [vmem:[#allocation7 + $0xd0] ss:$8 sps:$4 sm:$0xff]  }
  0x80   : > { %677 = vmatprep.mubr.bf16.mxu1 %v2895_v15  ;;  %v2875_v24 = vld [vmem:[#allocation7 + $0xc4] ss:$8 sps:$4 sm:$0xff]   ;;  %v2877_v25 = vld [vmem:[#allocation7 + $0xc0] ss:$8 sps:$4 sm:$0xff]   ;;  %v2878_v26 = vld [vmem:[#allocation7 + $0xb4] ss:$8 sps:$4 sm:$0xff]  }
  0x81   : > { %v2880_v27 = vld [vmem:[#allocation7 + $0xb0] ss:$8 sps:$4 sm:$0xff]   ;;  %v2881_v28 = vld [vmem:[#allocation7 + $0xa4] ss:$8 sps:$4 sm:$0xff]   ;;  %v2883_v29 = vld [vmem:[#allocation7 + $0xa0] ss:$8 sps:$4 sm:$0xff]  }
  0x82   : > { %610 = vmatpush1.bf16.msra.mxu0 %v2850_v5  ;;  %2678 = vmatpush1.bf16.msra.mxu1 %v2850_v5  ;;  %v2884_v30 = vld [vmem:[#allocation7 + $0x94] ss:$8 sps:$4 sm:$0xff]   ;;  %v2886_v31 = vld [vmem:[#allocation7 + $0x90] ss:$8 sps:$4 sm:$0xff]   ;;  %v2887_v32 = vld [vmem:[#allocation7 + $0x84] ss:$8 sps:$4 sm:$0xff]  }
  0x83   : > { %611 = vmatprep.subr.bf16.mxu0 %v2851_v6  ;;  %2663 = vmatprep.subr.bf16.mxu1 %v2851_v6  ;;  %v2889_v33 = vld [vmem:[#allocation7 + $0x80] ss:$8 sps:$4 sm:$0xff]   ;;  %v2896_v36 = vld [vmem:[%s3553_s29 + $0x14] ss:$8 sps:$4 sm:$0xff]   ;;  %v2898_v38 = vld [vmem:[%s3553_s29 + $0x10] ss:$8 sps:$4 sm:$0xff]  }
  0x84   : > { %v2890_v34 = vld [vmem:[%s3553_s29] ss:$8 sps:$4 sm:$0xff]   ;;  %v2899_v37 = vld [vmem:[%s3553_s29 + $0x54] ss:$8 sps:$4 sm:$0xff]   ;;  %v2901_v39 = vld [vmem:[%s3553_s29 + $0x50] ss:$8 sps:$4 sm:$0xff]  }
  0x85   : > { %v2893_v35 = vld [vmem:[%s3553_s29 + $0x40] ss:$8 sps:$4 sm:$0xff]   ;;  %v2902_v40 = vld [vmem:[%s3553_s29 + $0x24] ss:$8 sps:$4 sm:$0xff]   ;;  %v2908_v44 = vld [vmem:[%s3553_s29 + $0x34] ss:$8 sps:$4 sm:$0xff]  }
  0x86   : > { %612 = vmatpush1.bf16.msra.mxu0 %v2853_v7  ;;  %2679 = vmatpush1.bf16.msra.mxu1 %v2853_v7  ;;  %v2905_v41 = vld [vmem:[%s3553_s29 + $0x64] ss:$8 sps:$4 sm:$0xff]   ;;  %v2904_v42 = vld [vmem:[%s3553_s29 + $0x20] ss:$8 sps:$4 sm:$0xff]   ;;  %v2911_v45 = vld [vmem:[%s3553_s29 + $0x74] ss:$8 sps:$4 sm:$0xff]  }
  0x87   : > { %613 = vmatprep.subr.bf16.mxu0 %v2854_v8  ;;  %2664 = vmatprep.subr.bf16.mxu1 %v2854_v8  ;;  %v2907_v43 = vld [vmem:[%s3553_s29 + $0x60] ss:$8 sps:$4 sm:$0xff]   ;;  %v2910_v46 = vld [vmem:[%s3553_s29 + $0x30] ss:$8 sps:$4 sm:$0xff]   ;;  %v356_v49 = vshrl.u32 %v355_v48, 7 }
  0x88   : > { %v2913_v47 = vld [vmem:[%s3553_s29 + $0x70] ss:$8 sps:$4 sm:$0xff]   ;;  %v353_v52 = vld [vmem:[#allocation9] ss:$8 sm:$0x3] }
  0x89   : > { %v3590_v50 = vsub.s32 0, %v356_v49  ;;  %v3592_v51 = vsub.s32 1, %v356_v49 }
  0x8a   : > { %614 = vmatpush1.bf16.msra.mxu0 %v2856_v9  ;;  %2680 = vmatpush1.bf16.msra.mxu1 %v2856_v9 }
  0x8b   : > { %615 = vmatprep.subr.bf16.mxu0 %v2857_v10  ;;  %2665 = vmatprep.subr.bf16.mxu1 %v2857_v10  ;;  %v3595_v53 = vrot.slane %v353_v52, %v3590_v50  ;;  %v3598_v54 = vrot.slane %v353_v52, %v3592_v51 }
  0x8e   : > { %616 = vmatpush1.bf16.msra.mxu0 %v2859_v11  ;;  %2681 = vmatpush1.bf16.msra.mxu1 %v2859_v11 }
  0x8f   : > { %617 = vmatprep.subr.bf16.mxu0 %v2860_v12  ;;  %2666 = vmatprep.subr.bf16.mxu1 %v2860_v12 }
  0x92   : > { %618 = vmatpush1.bf16.msra.mxu0 %v2862_v14  ;;  %2682 = vmatpush1.bf16.msra.mxu1 %v2862_v14 }
  0x93   : > { %619 = vmatprep.subr.bf16.mxu0 %v2863_v16  ;;  %2667 = vmatprep.subr.bf16.mxu1 %v2863_v16 }
  0x96   : > { %620 = vmatpush1.bf16.msra.mxu0 %v2865_v17  ;;  %2683 = vmatpush1.bf16.msra.mxu1 %v2865_v17 }
  0x97   : > { %621 = vmatprep.subr.bf16.mxu0 %v2866_v18  ;;  %2668 = vmatprep.subr.bf16.mxu1 %v2866_v18 }
  0x9a   : > { %622 = vmatpush2.bf16.msra.mxu0 %v2868_v19  ;;  %2684 = vmatpush2.bf16.msra.mxu1 %v2868_v19 }
  0x9b   : > { %623 = vmatprep.subr.bf16.mxu0 %v2869_v20  ;;  %2669 = vmatprep.subr.bf16.mxu1 %v2869_v20 }
  0x9e   : > { %624 = vmatpush2.bf16.msra.mxu0 %v2871_v21  ;;  %2685 = vmatpush2.bf16.msra.mxu1 %v2871_v21 }
  0x9f   : > { %625 = vmatprep.subr.bf16.mxu0 %v2872_v22  ;;  %2670 = vmatprep.subr.bf16.mxu1 %v2872_v22 }
  0xa2   : > { %626 = vmatpush2.bf16.msra.mxu0 %v2874_v23  ;;  %2686 = vmatpush2.bf16.msra.mxu1 %v2874_v23 }
  0xa3   : > { %627 = vmatprep.subr.bf16.mxu0 %v2875_v24  ;;  %2671 = vmatprep.subr.bf16.mxu1 %v2875_v24 }
  0xa6   : > { %628 = vmatpush2.bf16.msra.mxu0 %v2877_v25  ;;  %2687 = vmatpush2.bf16.msra.mxu1 %v2877_v25 }
  0xa7   : > { %629 = vmatprep.subr.bf16.mxu0 %v2878_v26  ;;  %2672 = vmatprep.subr.bf16.mxu1 %v2878_v26 }
  0xaa   : > { %630 = vmatpush2.bf16.msra.mxu0 %v2880_v27  ;;  %2688 = vmatpush2.bf16.msra.mxu1 %v2880_v27 }
  0xab   : > { %631 = vmatprep.subr.bf16.mxu0 %v2881_v28  ;;  %2673 = vmatprep.subr.bf16.mxu1 %v2881_v28 }
  0xae   : > { %632 = vmatpush2.bf16.msra.mxu0 %v2883_v29  ;;  %2689 = vmatpush2.bf16.msra.mxu1 %v2883_v29 }
  0xaf   : > { %633 = vmatprep.subr.bf16.mxu0 %v2884_v30  ;;  %2674 = vmatprep.subr.bf16.mxu1 %v2884_v30 }
  0xb2   : > { %634 = vmatpush2.bf16.msra.mxu0 %v2886_v31  ;;  %2690 = vmatpush2.bf16.msra.mxu1 %v2886_v31 }
  0xb3   : > { %635 = vmatprep.subr.bf16.mxu0 %v2887_v32  ;;  %2675 = vmatprep.subr.bf16.mxu1 %v2887_v32 }
  0xb6   : > { %636 = vmatpush2.bf16.msra.mxu0 %v2889_v33  ;;  %2691 = vmatpush2.bf16.msra.mxu1 %v2889_v33 }
  0xb9   : > { %638 = vmatmul.mubr.bf16.vlgmr.msra.gmra.mxu0 %v2890_v34  ;;  %678 = vmatmul.mubr.bf16.vlgmr.msra.gmra.mxu1 %v2893_v35 }
  0xba   : > { %647 = vmatprep.mubr.bf16.mxu0 %v2896_v36  ;;  %687 = vmatprep.mubr.bf16.mxu1 %v2899_v37 }
  0xc1   : > { %648 = vmatmul.mubr.bf16.gmra.mxu0 %v2898_v38  ;;  %688 = vmatmul.mubr.bf16.gmra.mxu1 %v2901_v39 }
  0xc2   : > { %657 = vmatprep.mubr.bf16.mxu0 %v2902_v40  ;;  %697 = vmatprep.mubr.bf16.mxu1 %v2905_v41 }
  0xc9   : > { %658 = vmatmul.mubr.bf16.gmra.mxu0 %v2904_v42  ;;  %698 = vmatmul.mubr.bf16.gmra.mxu1 %v2907_v43 }
  0xca   : > { %667 = vmatprep.mubr.bf16.mxu0 %v2908_v44  ;;  %707 = vmatprep.mubr.bf16.mxu1 %v2911_v45 }
  0xd1   : > { %668 = vmatmul.mubr.bf16.gmra.mxu0 %v2910_v46  ;;  %708 = vmatmul.mubr.bf16.gmra.mxu1 %v2913_v47 }
 0x179   : > { %v639_v55 = vpop.f32.mrf.mxu0  ;;  %v679_v56 = vpop.f32.mrf.mxu1 }
 0x17a   : > { %v3601_v59 = vadd.f32 %v639_v55, %v3595_v53  ;;  %v3607_v63 = vadd.f32 %v679_v56, %v3595_v53 }
 0x17b   : > { %v641_v57 = vpop.f32.mrf.mxu0  ;;  %v681_v58 = vpop.f32.mrf.mxu1 }
 0x17c   : > { %v3604_v60 = vadd.f32 %v641_v57, %v3598_v54  ;;  %v3610_v0 = vadd.f32 %v681_v58, %v3598_v54 }
 0x17d   : > { %v643_v61 = vpop.f32.mrf.mxu0  ;;  %v683_v62 = vpop.f32.mrf.mxu1 }
 0x17e   : > { %v722_v1 = vadd.f32 %v3604_v60, %v3601_v59  ;;  %v3615_v4 = vadd.f32 %v683_v62, %v3595_v53  ;;  %v746_v11 = vadd.f32 %v3610_v0, %v3607_v63  ;;  %v3631_v12 = vadd.f32 %v643_v61, %v3595_v53 }
 0x17f   : > { %v645_v2 = vpop.f32.mrf.mxu0  ;;  %v685_v3 = vpop.f32.mrf.mxu1 }
 0x180   : > { %v3618_v5 = vadd.f32 %v685_v3, %v3598_v54  ;;  %723 = vadd.xlane.f32.xlu0 %v722_v1  ;;  %v3621_v8 = vadd.f32 %v645_v2, %v3598_v54 }
 0x181   : > { %v649_v6 = vpop.f32.mrf.mxu0  ;;  %v689_v7 = vpop.f32.mrf.mxu1 }
 0x182   : > { %v3624_v9 = vadd.f32 %v649_v6, %v3595_v53  ;;  %v749_v10 = vadd.f32 %v3618_v5, %v3615_v4  ;;  %v3637_v16 = vadd.f32 %v689_v7, %v3595_v53  ;;  %v725_v21 = vadd.f32 %v3621_v8, %v3631_v12 }
 0x183   : > { %v651_v13 = vpop.f32.mrf.mxu0  ;;  %v691_v14 = vpop.f32.mrf.mxu1 }
 0x184   : > { %v3634_v15 = vadd.f32 %v651_v13, %v3598_v54  ;;  %750 = vadd.xlane.f32.xlu1 %v749_v10  ;;  %747 = vadd.xlane.f32.xlu0 %v746_v11  ;;  %v3640_v17 = vadd.f32 %v691_v14, %v3598_v54 }
 0x185   : > { %v653_v18 = vpop.f32.mrf.mxu0  ;;  %v693_v19 = vpop.f32.mrf.mxu1 }
 0x186   : > { %v728_v20 = vadd.f32 %v3634_v15, %v3624_v9  ;;  %v3647_v24 = vadd.f32 %v653_v18, %v3595_v53  ;;  %v752_v26 = vadd.f32 %v3640_v17, %v3637_v16  ;;  %v3655_v29 = vadd.f32 %v693_v19, %v3595_v53 }
 0x187   : > { %v655_v22 = vpop.f32.mrf.mxu0  ;;  %v695_v23 = vpop.f32.mrf.mxu1 }
 0x188   : > { %v3650_v25 = vadd.f32 %v655_v22, %v3598_v54  ;;  %729 = vadd.xlane.f32.xlu1 %v728_v20  ;;  %726 = vadd.xlane.f32.xlu0 %v725_v21  ;;  %v3661_v31 = vadd.f32 %v695_v23, %v3598_v54 }
 0x189   : > { %v659_v27 = vpop.f32.mrf.mxu0  ;;  %v699_v28 = vpop.f32.mrf.mxu1 }
 0x18a   : > { %v3658_v30 = vadd.f32 %v659_v27, %v3595_v53  ;;  %v731_v32 = vadd.f32 %v3650_v25, %v3647_v24  ;;  %v3669_v36 = vadd.f32 %v699_v28, %v3595_v53  ;;  %v755_v40 = vadd.f32 %v3661_v31, %v3655_v29 }
 0x18b   : > { %v661_v33 = vpop.f32.mrf.mxu0  ;;  %v701_v34 = vpop.f32.mrf.mxu1 }
 0x18c   : > { %v3666_v35 = vadd.f32 %v661_v33, %v3598_v54  ;;  %732 = vadd.xlane.f32.xlu1 %v731_v32  ;;  %753 = vadd.xlane.f32.xlu0 %v752_v26  ;;  %v3672_v37 = vadd.f32 %v701_v34, %v3598_v54 }
 0x18d   : > { %v663_v38 = vpop.f32.mrf.mxu0  ;;  %v703_v39 = vpop.f32.mrf.mxu1 }
 0x18e   : > { %v734_v41 = vadd.f32 %v3666_v35, %v3658_v30  ;;  %v3679_v44 = vadd.f32 %v663_v38, %v3595_v53  ;;  %v758_v46 = vadd.f32 %v3672_v37, %v3669_v36  ;;  %v3687_v49 = vadd.f32 %v703_v39, %v3595_v53 }
 0x18f   : > { %v665_v42 = vpop.f32.mrf.mxu0  ;;  %v705_v43 = vpop.f32.mrf.mxu1 }
 0x190   : > { %v3682_v45 = vadd.f32 %v665_v42, %v3598_v54  ;;  %756 = vadd.xlane.f32.xlu1 %v755_v40  ;;  %735 = vadd.xlane.f32.xlu0 %v734_v41  ;;  %v3693_v55 = vadd.f32 %v705_v43, %v3598_v54 }
 0x191   : > { %v669_v47 = vpop.f32.mrf.mxu0  ;;  %v709_v48 = vpop.f32.mrf.mxu1 }
 0x192   : > { %v3690_v52 = vadd.f32 %v669_v47, %v3595_v53  ;;  %v737_v56 = vadd.f32 %v3682_v45, %v3679_v44  ;;  %v3701_v62 = vadd.f32 %v709_v48, %v3595_v53  ;;  %v761_v6 = vadd.f32 %v3693_v55, %v3687_v49 }
 0x193   : > { %v671_v57 = vpop.f32.mrf.mxu0  ;;  %v711_v58 = vpop.f32.mrf.mxu1 }
 0x194   : > { %v3698_v61 = vadd.f32 %v671_v57, %v3598_v54  ;;  %738 = vadd.xlane.f32.xlu1 %v737_v56  ;;  %759 = vadd.xlane.f32.xlu0 %v758_v46  ;;  %v3704_v1 = vadd.f32 %v711_v58, %v3598_v54 }
 0x195   : > { %v673_v2 = vpop.f32.mrf.mxu0  ;;  %v713_v3 = vpop.f32.mrf.mxu1 }
 0x196   : > { %v740_v7 = vadd.f32 %v3698_v61, %v3690_v52  ;;  %v3711_v13 = vadd.f32 %v673_v2, %v3595_v53  ;;  %v764_v18 = vadd.f32 %v3704_v1, %v3701_v62  ;;  %v3719_v19 = vadd.f32 %v713_v3, %v3595_v53 }
 0x197   : > { %v675_v10 = vpop.f32.mrf.mxu0  ;;  %v715_v11 = vpop.f32.mrf.mxu1 }
 0x198   : > { %v3714_v14 = vadd.f32 %v675_v10, %v3598_v54  ;;  %762 = vadd.xlane.f32.xlu1 %v761_v6  ;;  %741 = vadd.xlane.f32.xlu0 %v740_v7  ;;  %v3722_v20 = vadd.f32 %v715_v11, %v3598_v54 }
 0x19a   : > { %v743_v21 = vadd.f32 %v3714_v14, %v3711_v13  ;;  %v767_v22 = vadd.f32 %v3722_v20, %v3719_v19 }
 0x19c   : > { %744 = vadd.xlane.f32.xlu1 %v743_v21  ;;  %765 = vadd.xlane.f32.xlu0 %v764_v18 }
 0x1a0   : > { %768 = vadd.xlane.f32.xlu1 %v767_v22 }
 0x209   : > { %v724_v23 = vpop.xlane.xlu0 %723 }
 0x20a   : > { %v771_v26 = vmul.f32 0.00390625, %v724_v23 }
 0x20c   : > { %v3729_v27 = vsub.f32 %v3601_v59, %v771_v26  ;;  %v3732_v53 = vsub.f32 %v3604_v60, %v771_v26 }
 0x20d   : > { %v751_v28 = vpop.xlane.xlu1 %750  ;;  %v748_v54 = vpop.xlane.xlu0 %747 }
 0x20e   : > { %v779_v32 = vmul.f32 0.00390625, %v748_v54  ;;  %v819_v33 = vmul.f32 %v3729_v27, %v3729_v27  ;;  %v820_v34 = vmul.f32 %v3732_v53, %v3732_v53  ;;  %v780_v59 = vmul.f32 0.00390625, %v751_v28 }
 0x210   : > { %v3739_v38 = vsub.f32 %v3607_v63, %v779_v32  ;;  %v3742_v39 = vsub.f32 %v3610_v0, %v779_v32  ;;  %v851_v60 = vadd.f32 %v820_v34, %v819_v33  ;;  %v3761_v57 = vsub.f32 %v3615_v4, %v780_v59 }
 0x211   : > { %v730_v40 = vpop.xlane.xlu1 %729  ;;  %v727_v41 = vpop.xlane.xlu0 %726  ;;  %v3764_v58 = vsub.f32 %v3618_v5, %v780_v59 }
 0x212   : > { %v773_v42 = vmul.f32 0.00390625, %v730_v40  ;;  %v772_v43 = vmul.f32 0.00390625, %v727_v41  ;;  %v835_v46 = vmul.f32 %v3739_v38, %v3739_v38  ;;  %v836_v47 = vmul.f32 %v3742_v39, %v3742_v39  ;;  %852 = vadd.xlane.f32.xlu0 %v851_v60 }
 0x213   : > { %v837_v28 = vmul.f32 %v3761_v57, %v3761_v57 }
 0x214   : > { %v3749_v48 = vsub.f32 %v3624_v9, %v773_v42  ;;  %v3752_v63 = vsub.f32 %v3634_v15, %v773_v42  ;;  %v3755_v0 = vsub.f32 %v3631_v12, %v772_v43  ;;  %v3758_v56 = vsub.f32 %v3621_v8, %v772_v43 }
 0x215   : > { %v733_v2 = vpop.xlane.xlu1 %732  ;;  %v754_v3 = vpop.xlane.xlu0 %753  ;;  %v875_v6 = vadd.f32 %v836_v47, %v835_v46 }
 0x216   : > { %v774_v9 = vmul.f32 0.00390625, %v733_v2  ;;  %v781_v7 = vmul.f32 0.00390625, %v754_v3  ;;  %v823_v15 = vmul.f32 %v3749_v48, %v3749_v48  ;;  %v824_v12 = vmul.f32 %v3752_v63, %v3752_v63 }
 0x217   : > { %876 = vadd.xlane.f32.xlu0 %v875_v6  ;;  %v821_v8 = vmul.f32 %v3755_v0, %v3755_v0  ;;  %v822_v4 = vmul.f32 %v3758_v56, %v3758_v56 }
 0x218   : > { %v3775_v5 = vsub.f32 %v3647_v24, %v774_v9  ;;  %v3778_v10 = vsub.f32 %v3650_v25, %v774_v9  ;;  %v3781_v11 = vsub.f32 %v3637_v16, %v781_v7  ;;  %v3784_v18 = vsub.f32 %v3640_v17, %v781_v7 }
 0x219   : > { %v757_v21 = vpop.xlane.xlu1 %756  ;;  %v736_v22 = vpop.xlane.xlu0 %735  ;;  %v857_v23 = vadd.f32 %v824_v12, %v823_v15  ;;  %v854_v26 = vadd.f32 %v822_v4, %v821_v8  ;;  %v838_v24 = vmul.f32 %v3764_v58, %v3764_v58 }
 0x21a   : > { %v782_v54 = vmul.f32 0.00390625, %v757_v21  ;;  %v775_v32 = vmul.f32 0.00390625, %v736_v22  ;;  %v839_v25 = vmul.f32 %v3781_v11, %v3781_v11  ;;  %v840_v16 = vmul.f32 %v3784_v18, %v3784_v18 }
 0x21b   : > { %858 = vadd.xlane.f32.xlu0 %v857_v23  ;;  %855 = vadd.xlane.f32.xlu1 %v854_v26  ;;  %v825_v17 = vmul.f32 %v3775_v5, %v3775_v5  ;;  %v826_v40 = vmul.f32 %v3778_v10, %v3778_v10  ;;  %v878_v43 = vadd.f32 %v838_v24, %v837_v28 }
 0x21c   : > { %v3797_v33 = vsub.f32 %v3655_v29, %v782_v54  ;;  %v3800_v34 = vsub.f32 %v3658_v30, %v775_v32  ;;  %v3803_v59 = vsub.f32 %v3666_v35, %v775_v32  ;;  %v3808_v41 = vsub.f32 %v3661_v31, %v782_v54 }
 0x21d   : > { %v739_v60 = vpop.xlane.xlu1 %738  ;;  %v760_v42 = vpop.xlane.xlu0 %759  ;;  %v881_v46 = vadd.f32 %v840_v16, %v839_v25  ;;  %v860_v3 = vadd.f32 %v826_v40, %v825_v17 }
 0x21e   : > { %v776_v47 = vmul.f32 0.00390625, %v739_v60  ;;  %v783_v2 = vmul.f32 0.00390625, %v760_v42  ;;  %v827_v29 = vmul.f32 %v3800_v34, %v3800_v34  ;;  %v828_v30 = vmul.f32 %v3803_v59, %v3803_v59 }
 0x21f   : > { %879 = vadd.xlane.f32.xlu1 %v878_v43  ;;  %882 = vadd.xlane.f32.xlu0 %v881_v46  ;;  %v841_v6 = vmul.f32 %v3797_v33, %v3797_v33 }
 0x220   : > { %v3815_v35 = vsub.f32 %v3669_v36, %v783_v2  ;;  %v3818_v31 = vsub.f32 %v3672_v37, %v783_v2  ;;  %v3823_v9 = vsub.f32 %v3679_v44, %v776_v47  ;;  %v3826_v7 = vsub.f32 %v3682_v45, %v776_v47 }
 0x221   : > { %v763_v15 = vpop.xlane.xlu1 %762  ;;  %v742_v12 = vpop.xlane.xlu0 %741  ;;  %v863_v8 = vadd.f32 %v828_v30, %v827_v29  ;;  %v842_v36 = vmul.f32 %v3808_v41, %v3808_v41 }
 0x222   : > { %v784_v4 = vmul.f32 0.00390625, %v763_v15  ;;  %v777_v21 = vmul.f32 0.00390625, %v742_v12  ;;  %v843_v37 = vmul.f32 %v3815_v35, %v3815_v35  ;;  %v844_v22 = vmul.f32 %v3818_v31, %v3818_v31 }
 0x223   : > { %861 = vadd.xlane.f32.xlu1 %v860_v3  ;;  %864 = vadd.xlane.f32.xlu0 %v863_v8  ;;  %v884_v54 = vadd.f32 %v842_v36, %v841_v6  ;;  %v829_v25 = vmul.f32 %v3823_v9, %v3823_v9 }
 0x224   : > { %v3835_v44 = vsub.f32 %v3687_v49, %v784_v4  ;;  %v3838_v45 = vsub.f32 %v3693_v55, %v784_v4  ;;  %v3841_v23 = vsub.f32 %v3690_v52, %v777_v21  ;;  %v3844_v26 = vsub.f32 %v3698_v61, %v777_v21 }
 0x225   : > { %v745_v28 = vpop.xlane.xlu1 %744  ;;  %v766_v24 = vpop.xlane.xlu0 %765  ;;  %v887_v32 = vadd.f32 %v844_v22, %v843_v37  ;;  %v830_v49 = vmul.f32 %v3826_v7, %v3826_v7 }
 0x226   : > { %v778_v16 = vmul.f32 0.00390625, %v745_v28  ;;  %v785_v17 = vmul.f32 0.00390625, %v766_v24  ;;  %v831_v55 = vmul.f32 %v3841_v23, %v3841_v23  ;;  %v832_v52 = vmul.f32 %v3844_v26, %v3844_v26 }
 0x227   : > { %885 = vadd.xlane.f32.xlu1 %v884_v54  ;;  %888 = vadd.xlane.f32.xlu0 %v887_v32  ;;  %v845_v60 = vmul.f32 %v3835_v44, %v3835_v44  ;;  %v846_v42 = vmul.f32 %v3838_v45, %v3838_v45  ;;  %v866_v2 = vadd.f32 %v830_v49, %v829_v25 }
 0x228   : > { %v3855_v61 = vsub.f32 %v3701_v62, %v785_v17  ;;  %v3858_v40 = vsub.f32 %v3704_v1, %v785_v17  ;;  %v3865_v43 = vsub.f32 %v3711_v13, %v778_v16  ;;  %v3868_v46 = vsub.f32 %v3714_v14, %v778_v16 }
 0x229   : > { %v769_v47 = vpop.xlane.xlu1 %768  ;;  %v869_v29 = vadd.f32 %v832_v52, %v831_v55  ;;  %v890_v3 = vadd.f32 %v846_v42, %v845_v60 }
 0x22a   : > { %v786_v62 = vmul.f32 0.00390625, %v769_v47  ;;  %v847_v1 = vmul.f32 %v3855_v61, %v3855_v61  ;;  %v848_v30 = vmul.f32 %v3858_v40, %v3858_v40  ;;  %v833_v15 = vmul.f32 %v3865_v43, %v3865_v43 }
 0x22b   : > { %867 = vadd.xlane.f32.xlu1 %v866_v2  ;;  %870 = vadd.xlane.f32.xlu0 %v869_v29  ;;  %v834_v12 = vmul.f32 %v3868_v46, %v3868_v46  ;;  %v719_v2 = vld [vmem:[#allocation9 + $0x1] ss:$8 sm:$0x3] }
 0x22c   : > { %v893_v6 = vadd.f32 %v848_v30, %v847_v1  ;;  %v3875_v13 = vsub.f32 %v3719_v19, %v786_v62  ;;  %v3878_v14 = vsub.f32 %v3722_v20, %v786_v62  ;;  %v3318_v20 = vmov 0.0   ;;  %v721_v62 = vld [vmem:[#allocation9 + $0x2] ss:$8 sm:$0x3] }
 0x22d   : > { %v872_v8 = vadd.f32 %v834_v12, %v833_v15  ;;  %1386 = vst [vmem:[#allocation3 + $0xb0] sm:$0xff] %v3318_v20  ;;  %1387 = vst [vmem:[#allocation3] sm:$0xff] %v3318_v20 }
 0x22e   : > { %v849_v36 = vmul.f32 %v3875_v13, %v3875_v13  ;;  %v850_v4 = vmul.f32 %v3878_v14, %v3878_v14  ;;  %1388 = vst [vmem:[#allocation3 + $0xd8] sm:$0xff] %v3318_v20  ;;  %1389 = vst [vmem:[#allocation3 + $0x18] sm:$0xff] %v3318_v20 }
 0x22f   : > { %891 = vadd.xlane.f32.xlu1 %v890_v3  ;;  %894 = vadd.xlane.f32.xlu0 %v893_v6  ;;  %1390 = vst [vmem:[#allocation3 + $0x50] sm:$0xff] %v3318_v20  ;;  %1391 = vst [vmem:[#allocation3 + $0x68] sm:$0xff] %v3318_v20  ;;  %v3889_v3 = vrot.slane %v719_v2, %v3590_v50  ;;  %v3892_v6 = vrot.slane %v719_v2, %v3592_v51 }
 0x230   : > { %v896_v19 = vadd.f32 %v850_v4, %v849_v36  ;;  %1392 = vst [vmem:[#allocation3 + $0x30] sm:$0xff] %v3318_v20  ;;  %1393 = vst [vmem:[#allocation3 + $0x48] sm:$0xff] %v3318_v20 }
 0x231   : > { %1394 = vst [vmem:[#allocation3 + $0x80] sm:$0xff] %v3318_v20  ;;  %1395 = vst [vmem:[#allocation3 + $0x88] sm:$0xff] %v3318_v20 }
 0x232   : > { %1396 = vst [vmem:[#allocation3 + $0xe8] sm:$0xff] %v3318_v20  ;;  %1397 = vst [vmem:[#allocation3 + $0xb8] sm:$0xff] %v3318_v20 }
 0x233   : > { %873 = vadd.xlane.f32.xlu1 %v872_v8  ;;  %1398 = vst [vmem:[#allocation3 + $0x60] sm:$0xff] %v3318_v20  ;;  %1399 = vst [vmem:[#allocation3 + $0xf0] sm:$0xff] %v3318_v20  ;;  %v3895_v8 = vrot.slane %v721_v62, %v3590_v50 }
 0x234   : > { %1400 = vst [vmem:[#allocation3 + $0x8] sm:$0xff] %v3318_v20  ;;  %1401 = vst [vmem:[#allocation3 + $0x78] sm:$0xff] %v3318_v20 }
 0x235   : > { %1402 = vst [vmem:[#allocation3 + $0x38] sm:$0xff] %v3318_v20  ;;  %1403 = vst [vmem:[#allocation3 + $0x58] sm:$0xff] %v3318_v20 }
 0x236   : > { %1404 = vst [vmem:[#allocation3 + $0x40] sm:$0xff] %v3318_v20  ;;  %1405 = vst [vmem:[#allocation3 + $0xc8] sm:$0xff] %v3318_v20 }
 0x237   : > { %897 = vadd.xlane.f32.xlu1 %v896_v19  ;;  %1406 = vst [vmem:[#allocation3 + $0xe0] sm:$0xff] %v3318_v20  ;;  %1407 = vst [vmem:[#allocation3 + $0x90] sm:$0xff] %v3318_v20 }
 0x238   : > { %1408 = vst [vmem:[#allocation3 + $0x70] sm:$0xff] %v3318_v20  ;;  %1409 = vst [vmem:[#allocation3 + $0xc0] sm:$0xff] %v3318_v20 }
 0x239   : > { %1410 = vst [vmem:[#allocation3 + $0xa8] sm:$0xff] %v3318_v20  ;;  %1411 = vst [vmem:[#allocation3 + $0xd0] sm:$0xff] %v3318_v20 }
 0x23a   : > { %1412 = vst [vmem:[#allocation3 + $0x10] sm:$0xff] %v3318_v20  ;;  %1413 = vst [vmem:[#allocation3 + $0x28] sm:$0xff] %v3318_v20 }
 0x23b   : > { %1414 = vst [vmem:[#allocation3 + $0xa0] sm:$0xff] %v3318_v20  ;;  %1415 = vst [vmem:[#allocation3 + $0xf8] sm:$0xff] %v3318_v20 }
 0x23c   : > { %1416 = vst [vmem:[#allocation3 + $0x20] sm:$0xff] %v3318_v20  ;;  %1417 = vst [vmem:[#allocation3 + $0x98] sm:$0xff] %v3318_v20  ;;  %v3900_v20 = vrot.slane %v721_v62, %v3592_v51 }
 0x29b   : > { %v853_v21 = vpop.xlane.xlu0 %852 }
 0x29c   : > { %v899_v37 = vmul.f32 0.00390625, %v853_v21 }
 0x29e   : > { %v915_v22 = vadd.f32 1e-05, %v899_v37 }
 0x2a0   : > { %v877_v28 = vpop.xlane.xlu0 %876  ;;  %2914 = vrsqrt.f32 %v915_v22 }
 0x2a1   : > { %v907_v24 = vmul.f32 0.00390625, %v877_v28 }
 0x2a3   : > { %v923_v54 = vadd.f32 1e-05, %v907_v24 }
 0x2a4   : > { %v856_v32 = vpop.xlane.xlu1 %855  ;;  %v859_v25 = vpop.xlane.xlu0 %858 }
 0x2a5   : > { %2916 = vrsqrt.f32 %v923_v54  ;;  %v900_v49 = vmul.f32 0.00390625, %v856_v32  ;;  %v901_v16 = vmul.f32 0.00390625, %v859_v25 }
 0x2a7   : > { %v916_v17 = vadd.f32 1e-05, %v900_v49  ;;  %v917_v55 = vadd.f32 1e-05, %v901_v16 }
 0x2a8   : > { %v880_v52 = vpop.xlane.xlu1 %879  ;;  %v883_v60 = vpop.xlane.xlu0 %882 }
 0x2a9   : > { %2918 = vrsqrt.f32 %v916_v17  ;;  %v908_v42 = vmul.f32 0.00390625, %v880_v52  ;;  %v909_v47 = vmul.f32 0.00390625, %v883_v60 }
 0x2aa   : > { %2920 = vrsqrt.f32 %v917_v55 }
 0x2ab   : > { %v924_v29 = vadd.f32 1e-05, %v908_v42  ;;  %v925_v1 = vadd.f32 1e-05, %v909_v47 }
 0x2ac   : > { %v862_v30 = vpop.xlane.xlu1 %861  ;;  %v865_v60 = vpop.xlane.xlu0 %864 }
 0x2ad   : > { %2922 = vrsqrt.f32 %v924_v29  ;;  %v902_v15 = vmul.f32 0.00390625, %v862_v30  ;;  %v2915_v12 = vpop.eup %2914 }
 0x2ae   : > { %v947_v36 = vmul.f32 %v2915_v12, %v3729_v27  ;;  %v948_v4 = vmul.f32 %v2915_v12, %v3732_v53  ;;  %2924 = vrsqrt.f32 %v925_v1 }
 0x2af   : > { %v918_v19 = vadd.f32 1e-05, %v902_v15 }
 0x2b0   : > { %v886_v21 = vpop.xlane.xlu1 %885  ;;  %v990_v37 = vmul.f32 %v3889_v3, %v947_v36  ;;  %v991_v22 = vmul.f32 %v3892_v6, %v948_v4 }
 0x2b1   : > { %2926 = vrsqrt.f32 %v918_v19  ;;  %v910_v24 = vmul.f32 0.00390625, %v886_v21 }
 0x2b2   : > { %v2917_v28 = vpop.eup %2916  ;;  %v3905_v50 = vadd.f32 %v3895_v8, %v990_v37  ;;  %v3910_v54 = vadd.f32 %v3900_v20, %v991_v22 }
 0x2b3   : > { %v963_v27 = vmul.f32 %v2917_v28, %v3739_v38  ;;  %v964_v53 = vmul.f32 %v2917_v28, %v3742_v39  ;;  %v926_v49 = vadd.f32 1e-05, %v910_v24 }
 0x2b4   : > { %v1097_v17 = vmul.f32 0.70710677, %v3905_v50  ;;  %v1098_v38 = vmul.f32 0.70710677, %v3910_v54 }
 0x2b5   : > { %v1006_v32 = vmul.f32 %v3889_v3, %v963_v27  ;;  %v1007_v25 = vmul.f32 %v3892_v6, %v964_v53  ;;  %2928 = vrsqrt.f32 %v926_v49  ;;  %v889_v53 = vpop.xlane.xlu0 %888 }
 0x2b6   : > { %v2919_v51 = vpop.eup %2918  ;;  %2930 = verf.f32 %v1097_v17 }
 0x2b7   : > { %v2921_v16 = vpop.eup %2920  ;;  %v949_v55 = vmul.f32 %v2919_v51, %v3755_v0  ;;  %v950_v52 = vmul.f32 %v2919_v51, %v3758_v56  ;;  %v3920_v42 = vadd.f32 %v3895_v8, %v1006_v32  ;;  %v3926_v1 = vadd.f32 %v3900_v20, %v1007_v25 }
 0x2b8   : > { %v951_v39 = vmul.f32 %v2921_v16, %v3749_v48  ;;  %v952_v29 = vmul.f32 %v2921_v16, %v3752_v63  ;;  %v903_v0 = vmul.f32 0.00390625, %v865_v60  ;;  %2932 = verf.f32 %v1098_v38 }
 0x2b9   : > { %v992_v47 = vmul.f32 %v3889_v3, %v949_v55  ;;  %v993_v2 = vmul.f32 %v3892_v6, %v950_v52  ;;  %v1113_v4 = vmul.f32 0.70710677, %v3920_v42  ;;  %v1114_v21 = vmul.f32 0.70710677, %v3926_v1 }
 0x2ba   : > { %v2923_v62 = vpop.eup %2922  ;;  %v994_v30 = vmul.f32 %v3889_v3, %v951_v39  ;;  %v995_v15 = vmul.f32 %v3892_v6, %v952_v29  ;;  %v911_v52 = vmul.f32 0.00390625, %v889_v53 }
 0x2bb   : > { %v1035_v56 = vadd.f32 %v3895_v8, %v992_v47  ;;  %v3930_v48 = vadd.f32 %v3900_v20, %v993_v2  ;;  %v965_v12 = vmul.f32 %v2923_v62, %v3761_v57  ;;  %v966_v63 = vmul.f32 %v2923_v62, %v3764_v58  ;;  %v2925_v36 = vpop.eup %2924  ;;  %v868_v2 = vpop.xlane.xlu1 %867 }
 0x2bc   : > { %v3940_v22 = vadd.f32 %v3895_v8, %v994_v30  ;;  %v919_v57 = vadd.f32 1e-05, %v903_v0  ;;  %v3945_v58 = vadd.f32 %v3900_v20, %v995_v15  ;;  %v967_v32 = vmul.f32 %v2925_v36, %v3781_v11 }
 0x2bd   : > { %v1099_v19 = vmul.f32 0.70710677, %v1035_v56  ;;  %v1100_v37 = vmul.f32 0.70710677, %v3930_v48  ;;  %v1008_v28 = vmul.f32 %v3889_v3, %v965_v12  ;;  %v1009_v27 = vmul.f32 %v3892_v6, %v966_v63 }
 0x2be   : > { %v2927_v24 = vpop.eup %2926  ;;  %v1101_v51 = vmul.f32 0.70710677, %v3940_v22  ;;  %v968_v16 = vmul.f32 %v2925_v36, %v3784_v18  ;;  %v1102_v11 = vmul.f32 0.70710677, %v3945_v58  ;;  %v1010_v39 = vmul.f32 %v3889_v3, %v967_v32 }
 0x2bf   : > { %2934 = verf.f32 %v1099_v19  ;;  %v3950_v25 = vadd.f32 %v3895_v8, %v1008_v28  ;;  %v3953_v49 = vadd.f32 %v3900_v20, %v1009_v27  ;;  %v953_v17 = vmul.f32 %v2927_v24, %v3775_v5 }
 0x2c0   : > { %2936 = verf.f32 %v1100_v37  ;;  %v954_v55 = vmul.f32 %v2927_v24, %v3778_v10  ;;  %v1011_v47 = vmul.f32 %v3892_v6, %v968_v16  ;;  %v927_v10 = vadd.f32 1e-05, %v911_v52 }
 0x2c1   : > { %2938 = verf.f32 %v1113_v4  ;;  %v1115_v60 = vmul.f32 0.70710677, %v3950_v25  ;;  %v1116_v38 = vmul.f32 0.70710677, %v3953_v49  ;;  %v996_v18 = vmul.f32 %v3889_v3, %v953_v17 }
 0x2c2   : > { %2940 = verf.f32 %v1114_v21  ;;  %v997_v5 = vmul.f32 %v3892_v6, %v954_v55  ;;  %v2929_v29 = vpop.eup %2928  ;;  %v3972_v15 = vadd.f32 %v3895_v8, %v1010_v39  ;;  %v3975_v63 = vadd.f32 %v3900_v20, %v1011_v47  ;;  %v871_v55 = vpop.xlane.xlu0 %870 }
 0x2c3   : > { %2942 = vrsqrt.f32 %v919_v57  ;;  %v3966_v62 = vadd.f32 %v3895_v8, %v996_v18  ;;  %v2931_v30 = vpop.eup %2930  ;;  %v969_v19 = vmul.f32 %v2929_v29, %v3797_v33  ;;  %v1065_v21 = vmul.f32 0.5, %v3905_v50 }
 0x2c4   : > { %2944 = verf.f32 %v1101_v51  ;;  %v3969_v0 = vadd.f32 %v3900_v20, %v997_v5  ;;  %v1161_v37 = vadd.f32 1.0, %v2931_v30  ;;  %v970_v28 = vmul.f32 %v2929_v29, %v3808_v41  ;;  %v3983_v51 = vpop.xlane.xlu1 %891 }
 0x2c5   : > { %2946 = verf.f32 %v1115_v60  ;;  %v2933_v12 = vpop.eup %2932  ;;  %v1103_v36 = vmul.f32 0.70710677, %v3966_v62  ;;  %v1067_v57 = vmul.f32 0.5, %v1035_v56  ;;  %v1117_v53 = vmul.f32 0.70710677, %v3972_v15 }
 0x2c6   : > { %2948 = verf.f32 %v1116_v38  ;;  %v1104_v4 = vmul.f32 0.70710677, %v3969_v0  ;;  %v1162_v27 = vadd.f32 1.0, %v2933_v12  ;;  %v1118_v17 = vmul.f32 0.70710677, %v3975_v63 }
 0x2c7   : > { %2950 = verf.f32 %v1102_v11  ;;  %v1012_v33 = vmul.f32 %v3889_v3, %v969_v19  ;;  %v1013_v50 = vmul.f32 %v3892_v6, %v970_v28  ;;  %v1066_v41 = vmul.f32 0.5, %v3910_v54 }
 0x2c8   : > { %2952 = vrsqrt.f32 %v927_v10  ;;  %v1068_v60 = vmul.f32 0.5, %v3930_v48  ;;  %v904_v11 = vmul.f32 0.00390625, %v868_v2  ;;  %v1193_v39 = vmul.f32 %v1161_v37, %v1065_v21 }
 0x2c9   : > { %2954 = verf.f32 %v1103_v36  ;;  %v3991_v18 = vadd.f32 %v3895_v8, %v1012_v33  ;;  %v3994_v5 = vadd.f32 %v3900_v20, %v1013_v50  ;;  %v1194_v29 = vmul.f32 %v1162_v27, %v1066_v41 }
 0x2ca   : > { %2956 = verf.f32 %v1104_v4  ;;  %v905_v12 = vmul.f32 0.00390625, %v871_v55  ;;  %v1081_v54 = vmul.f32 0.5, %v3920_v42  ;;  %v1082_v19 = vmul.f32 0.5, %v3926_v1 }
 0x2cb   : > { %2958 = verf.f32 %v1117_v53  ;;  %v1119_v28 = vmul.f32 0.70710677, %v3991_v18  ;;  %v1083_v27 = vmul.f32 0.5, %v3950_v25  ;;  %v1084_v53 = vmul.f32 0.5, %v3953_v49 }
 0x2cc   : > { %v2935_v24 = vpop.eup %2934  ;;  %2960 = verf.f32 %v1118_v17  ;;  %v1120_v42 = vmul.f32 0.70710677, %v3994_v5  ;;  %v920_v1 = vadd.f32 1e-05, %v904_v11 }
 0x2cd   : > { %v2937_v32 = vpop.eup %2936  ;;  %v1163_v16 = vadd.f32 1.0, %v2935_v24  ;;  %v874_v24 = vpop.xlane.xlu1 %873  ;;  %2962 = verf.f32 %v1119_v28 }
 0x2ce   : > { %v2939_v52 = vpop.eup %2938  ;;  %v1164_v56 = vadd.f32 1.0, %v2937_v32  ;;  %2964 = verf.f32 %v1120_v42 }
 0x2cf   : > { %v2941_v38 = vpop.eup %2940  ;;  %v1195_v47 = vmul.f32 %v1163_v16, %v1067_v57  ;;  %v1177_v48 = vadd.f32 1.0, %v2939_v52  ;;  %2966 = vrsqrt.f32 %v920_v1 }
 0x2d0   : > { %v2943_v10 = vpop.eup %2942  ;;  %v1196_v30 = vmul.f32 %v1164_v56, %v1068_v60  ;;  %v1178_v21 = vadd.f32 1.0, %v2941_v38  ;;  %v1069_v56 = vmul.f32 0.5, %v3940_v22  ;;  %v1070_v38 = vmul.f32 0.5, %v3945_v58 }
 0x2d1   : > { %v2945_v36 = vpop.eup %2944  ;;  %v2569_v4 = vpack.c.bf16 %v1195_v47, %v1193_v39  ;;  %v955_v17 = vmul.f32 %v2943_v10, %v3800_v34  ;;  %v1209_v50 = vmul.f32 %v1177_v48, %v1081_v54  ;;  %v956_v52 = vmul.f32 %v2943_v10, %v3803_v59  ;;  %v895_v47 = vpop.xlane.xlu0 %894 }
 0x2d2   : > { %v2947_v2 = vpop.eup %2946  ;;  %v2609_v37 = vpack.c.bf16 %v1196_v30, %v1194_v29  ;;  %v1210_v41 = vmul.f32 %v1178_v21, %v1082_v19  ;;  %v1165_v60 = vadd.f32 1.0, %v2945_v36  ;;  %v1071_v34 = vmul.f32 0.5, %v3966_v62  ;;  %v898_v10 = vpop.xlane.xlu1 %897 }
 0x2d3   : > { %v2949_v57 = vpop.eup %2948  ;;  %2570 = vst [vmem:[#allocation2] sm:$0xff] %v2569_v4   ;;  %v1179_v32 = vadd.f32 1.0, %v2947_v2  ;;  %v1072_v54 = vmul.f32 0.5, %v3969_v0  ;;  %v998_v59 = vmul.f32 %v3889_v3, %v955_v17  ;;  %v999_v4 = vmul.f32 %v3892_v6, %v956_v52 }
 0x2d4   : > { %2610 = vst [vmem:[#allocation2 + $0x40] sm:$0xff] %v2609_v37   ;;  %v1180_v16 = vadd.f32 1.0, %v2949_v57  ;;  %v2951_v33 = vpop.eup %2950  ;;  %v921_v22 = vadd.f32 1e-05, %v905_v12  ;;  %v912_v58 = vmul.f32 0.00390625, %v3983_v51  ;;  %v1197_v2 = vmul.f32 %v1165_v60, %v1069_v56 }
 0x2d5   : > { %v1211_v55 = vmul.f32 %v1179_v32, %v1083_v27  ;;  %v2953_v49 = vpop.eup %2952  ;;  %v1166_v29 = vadd.f32 1.0, %v2951_v33  ;;  %v913_v19 = vmul.f32 0.00390625, %v895_v47  ;;  %v906_v21 = vmul.f32 0.00390625, %v874_v24 }
 0x2d6   : > { %v1212_v25 = vmul.f32 %v1180_v16, %v1084_v53  ;;  %v2955_v11 = vpop.eup %2954  ;;  %2968 = vrsqrt.f32 %v921_v22  ;;  %v928_v28 = vadd.f32 1e-05, %v912_v58  ;;  %v914_v0 = vmul.f32 0.00390625, %v898_v10 }
 0x2d7   : > { %v2589_v39 = vpack.c.bf16 %v1211_v55, %v1209_v50  ;;  %v2957_v36 = vpop.eup %2956  ;;  %v1167_v48 = vadd.f32 1.0, %v2955_v11  ;;  %v1198_v57 = vmul.f32 %v1166_v29, %v1070_v38  ;;  %v929_v53 = vadd.f32 1e-05, %v913_v19 }
 0x2d8   : > { %v2629_v30 = vpack.c.bf16 %v1212_v25, %v1210_v41  ;;  %v1168_v62 = vadd.f32 1.0, %v2957_v36  ;;  %v922_v32 = vadd.f32 1e-05, %v906_v21  ;;  %v2959_v42 = vpop.eup %2958  ;;  %v971_v17 = vmul.f32 %v2953_v49, %v3815_v35 }
 0x2d9   : > { %2649 = vst [vmem:[#allocation2 + $0x20] sm:$0xff] %v2589_v39   ;;  %v1199_v37 = vmul.f32 %v1167_v48, %v1071_v34  ;;  %2970 = vrsqrt.f32 %v928_v28  ;;  %v930_v12 = vadd.f32 1e-05, %v914_v0  ;;  %v2961_v51 = vpop.eup %2960  ;;  %v972_v33 = vmul.f32 %v2953_v49, %v3818_v31 }
 0x2da   : > { %2656 = vst [vmem:[#allocation2 + $0x60] sm:$0xff] %v2629_v30   ;;  %v1200_v27 = vmul.f32 %v1168_v62, %v1072_v54  ;;  %2972 = vrsqrt.f32 %v929_v53  ;;  %v4014_v24 = vadd.f32 %v3895_v8, %v998_v59  ;;  %v1181_v50 = vadd.f32 1.0, %v2959_v42  ;;  %v2963_v55 = vpop.eup %2962 }
 0x2db   : > { %v2574_v16 = vpack.c.bf16 %v1199_v37, %v1197_v2  ;;  %2974 = vrsqrt.f32 %v922_v32  ;;  %v1182_v52 = vadd.f32 1.0, %v2961_v51  ;;  %v4017_v41 = vadd.f32 %v3900_v20, %v999_v4  ;;  %v2965_v60 = vpop.eup %2964 }
 0x2dc   : > { %v2614_v1 = vpack.c.bf16 %v1200_v27, %v1198_v57  ;;  %v1014_v35 = vmul.f32 %v3889_v3, %v971_v17  ;;  %2976 = vrsqrt.f32 %v930_v12  ;;  %v1085_v25 = vmul.f32 0.5, %v3972_v15  ;;  %v2967_v38 = vpop.eup %2966 }
 0x2dd   : > { %2646 = vst [vmem:[#allocation2 + $0x8] sm:$0xff] %v2574_v16   ;;  %v1087_v31 = vmul.f32 0.5, %v3991_v18  ;;  %v1183_v49 = vadd.f32 1.0, %v2963_v55  ;;  %v1015_v56 = vmul.f32 %v3892_v6, %v972_v33  ;;  %v1086_v39 = vmul.f32 0.5, %v3975_v63 }
 0x2de   : > { %2653 = vst [vmem:[#allocation2 + $0x48] sm:$0xff] %v2614_v1   ;;  %v1105_v34 = vmul.f32 0.70710677, %v4014_v24  ;;  %v1088_v47 = vmul.f32 0.5, %v3994_v5  ;;  %v1184_v11 = vadd.f32 1.0, %v2965_v60  ;;  %v1213_v29 = vmul.f32 %v1181_v50, %v1085_v25 }
 0x2df   : > { %v1215_v30 = vmul.f32 %v1183_v49, %v1087_v31  ;;  %v957_v54 = vmul.f32 %v2967_v38, %v3823_v9  ;;  %v958_v59 = vmul.f32 %v2967_v38, %v3826_v7  ;;  %v1214_v15 = vmul.f32 %v1182_v52, %v1086_v39 }
 0x2e0   : > { %v1106_v18 = vmul.f32 0.70710677, %v4017_v41  ;;  %v1216_v10 = vmul.f32 %v1184_v11, %v1088_v47  ;;  %v4030_v36 = vadd.f32 %v3895_v8, %v1014_v35  ;;  %v4033_v63 = vadd.f32 %v3900_v20, %v1015_v56 }
 0x2e1   : > { %v2594_v48 = vpack.c.bf16 %v1215_v30, %v1213_v29  ;;  %v1000_v5 = vmul.f32 %v3889_v3, %v957_v54  ;;  %v1001_v4 = vmul.f32 %v3892_v6, %v958_v59  ;;  %2978 = verf.f32 %v1105_v34 }
 0x2e2   : > { %v2634_v22 = vpack.c.bf16 %v1216_v10, %v1214_v15  ;;  %2980 = verf.f32 %v1106_v18  ;;  %v1121_v21 = vmul.f32 0.70710677, %v4030_v36  ;;  %v1122_v37 = vmul.f32 0.70710677, %v4033_v63 }
 0x2e3   : > { %v2969_v58 = vpop.eup %2968  ;;  %2650 = vst [vmem:[#allocation2 + $0x28] sm:$0xff] %v2594_v48   ;;  %v4038_v9 = vadd.f32 %v3895_v8, %v1000_v5  ;;  %v4041_v7 = vadd.f32 %v3900_v20, %v1001_v4  ;;  %v1073_v18 = vmul.f32 0.5, %v4014_v24 }
 0x2e4   : > { %2657 = vst [vmem:[#allocation2 + $0x68] sm:$0xff] %v2634_v22   ;;  %v959_v2 = vmul.f32 %v2969_v58, %v3841_v23  ;;  %v960_v62 = vmul.f32 %v2969_v58, %v3844_v26 }
 0x2e5   : > { %v1107_v28 = vmul.f32 0.70710677, %v4038_v9  ;;  %v1108_v57 = vmul.f32 0.70710677, %v4041_v7  ;;  %v1076_v24 = vmul.f32 0.5, %v4041_v7 }
 0x2e6   : > { %v2971_v19 = vpop.eup %2970  ;;  %v1002_v27 = vmul.f32 %v3889_v3, %v959_v2  ;;  %v1003_v53 = vmul.f32 %v3892_v6, %v960_v62 }
 0x2e7   : > { %v2973_v0 = vpop.eup %2972  ;;  %v973_v32 = vmul.f32 %v2971_v19, %v3835_v44  ;;  %2982 = verf.f32 %v1107_v28  ;;  %v974_v23 = vmul.f32 %v2971_v19, %v3838_v45 }
 0x2e8   : > { %v2975_v42 = vpop.eup %2974  ;;  %v975_v26 = vmul.f32 %v2973_v0, %v3855_v61  ;;  %v976_v16 = vmul.f32 %v2973_v0, %v3858_v40  ;;  %2984 = verf.f32 %v1108_v57  ;;  %v4056_v17 = vadd.f32 %v3895_v8, %v1002_v27 }
 0x2e9   : > { %v4059_v12 = vadd.f32 %v3900_v20, %v1003_v53  ;;  %v1016_v51 = vmul.f32 %v3889_v3, %v973_v32  ;;  %v2977_v1 = vpop.eup %2976  ;;  %v1017_v44 = vmul.f32 %v3892_v6, %v974_v23  ;;  %v961_v61 = vmul.f32 %v2975_v42, %v3865_v43 }
 0x2ea   : > { %v1018_v33 = vmul.f32 %v3889_v3, %v975_v26  ;;  %v1019_v45 = vmul.f32 %v3892_v6, %v976_v16  ;;  %2986 = verf.f32 %v1121_v21  ;;  %v1109_v40 = vmul.f32 0.70710677, %v4056_v17 }
 0x2eb   : > { %2988 = verf.f32 %v1122_v37  ;;  %v1059_v50 = vadd.f32 %v3895_v8, %v1016_v51  ;;  %v4069_v55 = vadd.f32 %v3900_v20, %v1017_v44  ;;  %v962_v60 = vmul.f32 %v2975_v42, %v3868_v46 }
 0x2ec   : > { %v4072_v52 = vadd.f32 %v3895_v8, %v1018_v33  ;;  %v4075_v35 = vadd.f32 %v3900_v20, %v1019_v45  ;;  %v1004_v25 = vmul.f32 %v3889_v3, %v961_v61  ;;  %v977_v43 = vmul.f32 %v2977_v1, %v3875_v13 }
 0x2ed   : > { %v1110_v31 = vmul.f32 0.70710677, %v4059_v12  ;;  %v1123_v49 = vmul.f32 0.70710677, %v1059_v50  ;;  %2990 = verf.f32 %v1109_v40  ;;  %v1124_v56 = vmul.f32 0.70710677, %v4069_v55 }
 0x2ee   : > { %v1125_v38 = vmul.f32 0.70710677, %v4072_v52  ;;  %v1005_v39 = vmul.f32 %v3892_v6, %v962_v60  ;;  %v4085_v34 = vadd.f32 %v3895_v8, %v1004_v25  ;;  %v2979_v47 = vpop.eup %2978  ;;  %v1126_v46 = vmul.f32 0.70710677, %v4075_v35 }
 0x2ef   : > { %2992 = verf.f32 %v1123_v49  ;;  %v978_v13 = vmul.f32 %v2977_v1, %v3878_v14  ;;  %v1020_v11 = vmul.f32 %v3889_v3, %v977_v43  ;;  %v2981_v29 = vpop.eup %2980  ;;  %v1169_v10 = vadd.f32 1.0, %v2979_v47 }
 0x2f0   : > { %2994 = verf.f32 %v1124_v56  ;;  %v4091_v30 = vadd.f32 %v3900_v20, %v1005_v39  ;;  %v1111_v54 = vmul.f32 0.70710677, %v4085_v34  ;;  %v1170_v48 = vadd.f32 1.0, %v2981_v29 }
 0x2f1   : > { %2996 = verf.f32 %v1110_v31  ;;  %v1021_v59 = vmul.f32 %v3892_v6, %v978_v13  ;;  %v4096_v15 = vadd.f32 %v3895_v8, %v1020_v11  ;;  %v1074_v6 = vmul.f32 0.5, %v4017_v41 }
 0x2f2   : > { %2998 = verf.f32 %v1125_v38  ;;  %v1112_v14 = vmul.f32 0.70710677, %v4091_v30  ;;  %v1075_v8 = vmul.f32 0.5, %v4038_v9  ;;  %v1201_v21 = vmul.f32 %v1169_v10, %v1073_v18 }
 0x2f3   : > { %3000 = verf.f32 %v1111_v54  ;;  %v4101_v5 = vadd.f32 %v3900_v20, %v1021_v59  ;;  %v1127_v4 = vmul.f32 0.70710677, %v4096_v15  ;;  %v1202_v28 = vmul.f32 %v1170_v48, %v1074_v6 }
 0x2f4   : > { %v2983_v3 = vpop.eup %2982  ;;  %3002 = verf.f32 %v1126_v46  ;;  %v1089_v42 = vmul.f32 0.5, %v4030_v36  ;;  %v1091_v23 = vmul.f32 0.5, %v1059_v50  ;;  %v1090_v51 = vmul.f32 0.5, %v4033_v63 }
 0x2f5   : > { %v2985_v22 = vpop.eup %2984  ;;  %v1171_v58 = vadd.f32 1.0, %v2983_v3  ;;  %3004 = verf.f32 %v1112_v14  ;;  %v1128_v62 = vmul.f32 0.70710677, %v4101_v5  ;;  %v1092_v1 = vmul.f32 0.5, %v4069_v55 }
 0x2f6   : > { %v1172_v2 = vadd.f32 1.0, %v2985_v22  ;;  %3006 = verf.f32 %v1127_v4  ;;  %v1077_v43 = vmul.f32 0.5, %v4056_v17  ;;  %v1079_v50 = vmul.f32 0.5, %v4085_v34 }
 0x2f7   : > { %v2987_v19 = vpop.eup %2986  ;;  %v1203_v37 = vmul.f32 %v1171_v58, %v1075_v8  ;;  %3008 = verf.f32 %v1128_v62  ;;  %v1078_v63 = vmul.f32 0.5, %v4059_v12  ;;  %v1080_v11 = vmul.f32 0.5, %v4091_v30 }
 0x2f8   : > { %v2989_v20 = vpop.eup %2988  ;;  %v1204_v0 = vmul.f32 %v1172_v2, %v1076_v24  ;;  %v1185_v53 = vadd.f32 1.0, %v2987_v19  ;;  %v1093_v17 = vmul.f32 0.5, %v4072_v52  ;;  %v1095_v18 = vmul.f32 0.5, %v4096_v15 }
 0x2f9   : > { %v2579_v57 = vpack.c.bf16 %v1203_v37, %v1201_v21  ;;  %v1186_v32 = vadd.f32 1.0, %v2989_v20  ;;  %v1094_v12 = vmul.f32 0.5, %v4075_v35  ;;  %v1096_v22 = vmul.f32 0.5, %v4101_v5 }
 0x2fa   : > { %v2619_v27 = vpack.c.bf16 %v1204_v0, %v1202_v28  ;;  %v2991_v41 = vpop.eup %2990  ;;  %v1217_v45 = vmul.f32 %v1185_v53, %v1089_v42 }
 0x2fb   : > { %2647 = vst [vmem:[#allocation2 + $0x10] sm:$0xff] %v2579_v57   ;;  %v1173_v61 = vadd.f32 1.0, %v2991_v41  ;;  %v1218_v25 = vmul.f32 %v1186_v32, %v1090_v51 }
 0x2fc   : > { %v2993_v9 = vpop.eup %2992  ;;  %2654 = vst [vmem:[#allocation2 + $0x50] sm:$0xff] %v2619_v27  }
 0x2fd   : > { %v2995_v7 = vpop.eup %2994  ;;  %v1187_v26 = vadd.f32 1.0, %v2993_v9  ;;  %v1205_v13 = vmul.f32 %v1173_v61, %v1077_v43 }
 0x2fe   : > { %v2997_v16 = vpop.eup %2996  ;;  %v1188_v44 = vadd.f32 1.0, %v2995_v7 }
 0x2ff   : > { %v2999_v33 = vpop.eup %2998  ;;  %v1219_v40 = vmul.f32 %v1187_v26, %v1091_v23  ;;  %v1174_v56 = vadd.f32 1.0, %v2997_v16 }
 0x300   : > { %v3001_v60 = vpop.eup %3000  ;;  %v1220_v31 = vmul.f32 %v1188_v44, %v1092_v1  ;;  %v1189_v47 = vadd.f32 1.0, %v2999_v33 }
 0x301   : > { %v3003_v49 = vpop.eup %3002  ;;  %v2599_v36 = vpack.c.bf16 %v1219_v40, %v1217_v45  ;;  %v1175_v38 = vadd.f32 1.0, %v3001_v60  ;;  %v1206_v14 = vmul.f32 %v1174_v56, %v1078_v63 }
 0x302   : > { %v3005_v39 = vpop.eup %3004  ;;  %v2639_v55 = vpack.c.bf16 %v1220_v31, %v1218_v25  ;;  %v1190_v59 = vadd.f32 1.0, %v3003_v49  ;;  %v1221_v4 = vmul.f32 %v1189_v47, %v1093_v17 }
 0x303   : > { %v3007_v46 = vpop.eup %3006  ;;  %2651 = vst [vmem:[#allocation2 + $0x30] sm:$0xff] %v2599_v36   ;;  %v1176_v29 = vadd.f32 1.0, %v3005_v39  ;;  %v1207_v54 = vmul.f32 %v1175_v38, %v1079_v50 }
 0x304   : > { %2658 = vst [vmem:[#allocation2 + $0x70] sm:$0xff] %v2639_v55   ;;  %v1191_v34 = vadd.f32 1.0, %v3007_v46  ;;  %v3009_v10 = vpop.eup %3008  ;;  %v1222_v58 = vmul.f32 %v1190_v59, %v1094_v12 }
 0x305   : > { %v1208_v3 = vmul.f32 %v1176_v29, %v1080_v11  ;;  %v2584_v48 = vpack.c.bf16 %v1207_v54, %v1205_v13  ;;  %v1192_v6 = vadd.f32 1.0, %v3009_v10 }
 0x306   : > { %v1223_v30 = vmul.f32 %v1191_v34, %v1095_v18 }
 0x307   : > { %2648 = vst [vmem:[#allocation2 + $0x18] sm:$0xff] %v2584_v48   ;;  %v2624_v8 = vpack.c.bf16 %v1208_v3, %v1206_v14  ;;  %v1224_v24 = vmul.f32 %v1192_v6, %v1096_v22 }
 0x308   : > { %v2604_v52 = vpack.c.bf16 %v1223_v30, %v1221_v4 }
 0x309   : > { %2655 = vst [vmem:[#allocation2 + $0x58] sm:$0xff] %v2624_v8   ;;  %v2644_v15 = vpack.c.bf16 %v1224_v24, %v1222_v58 }
 0x30a   : > { %2652 = vst [vmem:[#allocation2 + $0x38] sm:$0xff] %v2604_v52  }
 0x30b   : > { %2659 = vst [vmem:[#allocation2 + $0x78] sm:$0xff] %v2644_v15  }
 0x30c PF: > { %v3010_v35 = vld [vmem:[%s3564_s11 + $0x74] ss:$8 sps:$4 sm:$0xff]   ;;  %v3012_v5 = vld [vmem:[%s3564_s11 + $0x70] ss:$8 sps:$4 sm:$0xff]   ;;  %v3319_v2 = vmov 0   ;;  %s2563_s28 = sshll.u32 %s3294_s21, 6 }
 0x30d   : > { %1645 = vmatprep.mubr.bf16.mxu0 %v3319_v2  ;;  %1685 = vmatprep.mubr.bf16.mxu1 %v3319_v2  ;;  %v3013_v62 = vld [vmem:[%s3564_s11 + $0x64] ss:$8 sps:$4 sm:$0xff]   ;;  %v3015_v19 = vld [vmem:[%s3564_s11 + $0x60] ss:$8 sps:$4 sm:$0xff]   ;;  %v3016_v21 = vld [vmem:[%s3564_s11 + $0x54] ss:$8 sps:$4 sm:$0xff]  }
 0x30e   : > { %1613 = vmatprep.subr.bf16.mxu0 %v3010_v35  ;;  %2692 = vmatprep.subr.bf16.mxu1 %v3010_v35  ;;  %v3018_v37 = vld [vmem:[%s3564_s11 + $0x50] ss:$8 sps:$4 sm:$0xff]   ;;  %v3019_v20 = vld [vmem:[%s3564_s11 + $0x44] ss:$8 sps:$4 sm:$0xff]   ;;  %s4129_s5 = scalar_lea.vmem [#allocation2], %s2563_s28  ;;  %p2520_p1 = scmp.ne.s32.totalorder %s3294_s21, 1 }
 0x30f   : > { %1614 = vmatpush1.bf16.msra.mxu0 %v3012_v5  ;;  %2700 = vmatpush1.bf16.msra.mxu1 %v3012_v5  ;;  %v3021_v28 = vld [vmem:[%s3564_s11 + $0x40] ss:$8 sps:$4 sm:$0xff]   ;;  %v3022_v0 = vld [vmem:[%s3564_s11 + $0x34] ss:$8 sps:$4 sm:$0xff]   ;;  %v3024_v57 = vld [vmem:[%s3564_s11 + $0x30] ss:$8 sps:$4 sm:$0xff]  }
 0x310   : > { %1615 = vmatprep.subr.bf16.mxu0 %v3013_v62  ;;  %2693 = vmatprep.subr.bf16.mxu1 %v3013_v62  ;;  %v3025_v27 = vld [vmem:[%s3564_s11 + $0x24] ss:$8 sps:$4 sm:$0xff]   ;;  %v3027_v41 = vld [vmem:[%s3564_s11 + $0x20] ss:$8 sps:$4 sm:$0xff]   ;;  %v3028_v53 = vld [vmem:[%s3564_s11 + $0x14] ss:$8 sps:$4 sm:$0xff]  }
 0x311   : > { %v3030_v9 = vld [vmem:[%s3564_s11 + $0x10] ss:$8 sps:$4 sm:$0xff]   ;;  %v3031_v32 = vld [vmem:[%s3564_s11 + $0x4] ss:$8 sps:$4 sm:$0xff]   ;;  %v3033_v7 = vld [vmem:[%s3564_s11] ss:$8 sps:$4 sm:$0xff]  }
 0x312   : > { %v3034_v42 = vld [vmem:[%s4129_s5] sm:$0xff]   ;;  %v3036_v26 = vld [vmem:[%s4129_s5 + $0x8] sm:$0xff]   ;;  %v3038_v51 = vld [vmem:[%s4129_s5 + $0x10] sm:$0xff]  }
 0x313   : > { %1616 = vmatpush1.bf16.msra.mxu0 %v3015_v19  ;;  %2701 = vmatpush1.bf16.msra.mxu1 %v3015_v19  ;;  %v3035_v23 = vld [vmem:[%s4129_s5 + $0x20] sm:$0xff]   ;;  %v3037_v16 = vld [vmem:[%s4129_s5 + $0x28] sm:$0xff]   ;;  %v3039_v1 = vld [vmem:[%s4129_s5 + $0x30] sm:$0xff]  }
 0x314   : > { %1617 = vmatprep.subr.bf16.mxu0 %v3016_v21  ;;  %2694 = vmatprep.subr.bf16.mxu1 %v3016_v21  ;;  %v3040_v44 = vld [vmem:[%s4129_s5 + $0x18] sm:$0xff]   ;;  %v1418_v45 = vld [vmem:[#allocation3 + $0xb0] sm:$0xff]  ;;  %v1419_v25 = vld [vmem:[#allocation3] sm:$0xff] }
 0x315   : > { %v3041_v33 = vld [vmem:[%s4129_s5 + $0x38] sm:$0xff]   ;;  %v1436_v38 = vld [vmem:[#allocation3 + $0x40] sm:$0xff]  ;;  %v1437_v13 = vld [vmem:[#allocation3 + $0xc8] sm:$0xff] }
 0x316   : > { %v1434_v61 = vld [vmem:[#allocation3 + $0x38] sm:$0xff]  ;;  %v1422_v59 = vld [vmem:[#allocation3 + $0x50] sm:$0xff]  ;;  %v1438_v18 = vld [vmem:[#allocation3 + $0xe0] sm:$0xff] }
 0x317   : > { %1618 = vmatpush1.bf16.msra.mxu0 %v3018_v37  ;;  %2702 = vmatpush1.bf16.msra.mxu1 %v3018_v37  ;;  %v1435_v43 = vld [vmem:[#allocation3 + $0x58] sm:$0xff]  ;;  %v1423_v3 = vld [vmem:[#allocation3 + $0x68] sm:$0xff]  ;;  %v1439_v48 = vld [vmem:[#allocation3 + $0x90] sm:$0xff] }
 0x318   : > { %1619 = vmatprep.subr.bf16.mxu0 %v3019_v20  ;;  %2695 = vmatprep.subr.bf16.mxu1 %v3019_v20  ;;  %v1420_v50 = vld [vmem:[#allocation3 + $0xd8] sm:$0xff]  ;;  %v1424_v8 = vld [vmem:[#allocation3 + $0x30] sm:$0xff]  ;;  %v1425_v5 = vld [vmem:[#allocation3 + $0x48] sm:$0xff] }
 0x319   : > { %v1421_v46 = vld [vmem:[#allocation3 + $0x18] sm:$0xff]  ;;  %v1440_v58 = vld [vmem:[#allocation3 + $0x70] sm:$0xff]  ;;  %v1426_v20 = vld [vmem:[#allocation3 + $0x80] sm:$0xff] }
 0x31b   : > { %1620 = vmatpush1.bf16.msra.mxu0 %v3021_v28  ;;  %2703 = vmatpush1.bf16.msra.mxu1 %v3021_v28  ;;  %v1442_v28 = vld [vmem:[#allocation3 + $0xa8] sm:$0xff] }
 0x31c   : > { %1621 = vmatprep.subr.bf16.mxu0 %v3022_v0  ;;  %2696 = vmatprep.subr.bf16.mxu1 %v3022_v0 }
 0x31f   : > { %1622 = vmatpush1.bf16.msra.mxu0 %v3024_v57  ;;  %2704 = vmatpush1.bf16.msra.mxu1 %v3024_v57 }
 0x320   : > { %1623 = vmatprep.subr.bf16.mxu0 %v3025_v27  ;;  %2697 = vmatprep.subr.bf16.mxu1 %v3025_v27 }
 0x323   : > { %1624 = vmatpush1.bf16.msra.mxu0 %v3027_v41  ;;  %2705 = vmatpush1.bf16.msra.mxu1 %v3027_v41 }
 0x324   : > { %1625 = vmatprep.subr.bf16.mxu0 %v3028_v53  ;;  %2698 = vmatprep.subr.bf16.mxu1 %v3028_v53  ;;  %v1427_v53 = vld [vmem:[#allocation3 + $0x88] sm:$0xff] }
 0x327   : > { %1626 = vmatpush1.bf16.msra.mxu0 %v3030_v9  ;;  %2706 = vmatpush1.bf16.msra.mxu1 %v3030_v9  ;;  %v1443_v9 = vld [vmem:[#allocation3 + $0xd0] sm:$0xff] }
 0x328   : > { %1627 = vmatprep.subr.bf16.mxu0 %v3031_v32  ;;  %2699 = vmatprep.subr.bf16.mxu1 %v3031_v32 }
 0x32b   : > { %1628 = vmatpush1.bf16.msra.mxu0 %v3033_v7  ;;  %2707 = vmatpush1.bf16.msra.mxu1 %v3033_v7 }
 0x32e   : > { %1646 = vmatmul.mubr.bf16.vlgmr.msra.gmra.mxu0 %v3034_v42  ;;  %1686 = vmatmul.mubr.bf16.vlgmr.msra.gmra.mxu1 %v3035_v23 }
 0x32f   : > { %1655 = vmatprep.mubr.bf16.mxu0 %v3319_v2  ;;  %1695 = vmatprep.mubr.bf16.mxu1 %v3319_v2 }
 0x336   : > { %1656 = vmatmul.mubr.bf16.gmra.mxu0 %v3036_v26  ;;  %1696 = vmatmul.mubr.bf16.gmra.mxu1 %v3037_v16  ;;  %v1428_v26 = vld [vmem:[#allocation3 + $0xe8] sm:$0xff]  ;;  %v1444_v16 = vld [vmem:[#allocation3 + $0x10] sm:$0xff] }
 0x337   : > { %1665 = vmatprep.mubr.bf16.mxu0 %v3319_v2  ;;  %1705 = vmatprep.mubr.bf16.mxu1 %v3319_v2 }
 0x33e   : > { %1666 = vmatmul.mubr.bf16.gmra.mxu0 %v3038_v51  ;;  %1706 = vmatmul.mubr.bf16.gmra.mxu1 %v3039_v1 }
 0x33f   : > { %1675 = vmatprep.mubr.bf16.mxu0 %v3319_v2  ;;  %1715 = vmatprep.mubr.bf16.mxu1 %v3319_v2  ;;  %v1441_v2 = vld [vmem:[#allocation3 + $0xc0] sm:$0xff] }
 0x346   : > { %1676 = vmatmul.mubr.bf16.gmra.mxu0 %v3040_v44  ;;  %1716 = vmatmul.mubr.bf16.gmra.mxu1 %v3041_v33 }
 0x3ee   : > { %v1647_v40 = vpop.f32.mrf.mxu0  ;;  %v1687_v60 = vpop.f32.mrf.mxu1 }
 0x3ef   : > { %v1726_v31 = vadd.f32 %v1647_v40, %v1418_v45  ;;  %v1742_v49 = vadd.f32 %v1687_v60, %v1434_v61  ;;  %v1429_v45 = vld [vmem:[#allocation3 + $0xb8] sm:$0xff]  ;;  %v1445_v61 = vld [vmem:[#allocation3 + $0x28] sm:$0xff] }
 0x3f0   : > { %v1649_v56 = vpop.f32.mrf.mxu0  ;;  %v1689_v36 = vpop.f32.mrf.mxu1 }
 0x3f1   : > { %1758 = vst [vmem:[#allocation3 + $0xb0] sm:$0xff] %v1726_v31  ;;  %1774 = vst [vmem:[#allocation3 + $0x38] sm:$0xff] %v1742_v49  ;;  %v1727_v39 = vadd.f32 %v1649_v56, %v1419_v25  ;;  %v1743_v63 = vadd.f32 %v1689_v36, %v1435_v43  ;;  %v1430_v31 = vld [vmem:[#allocation3 + $0x60] sm:$0xff] }
 0x3f2   : > { %v1651_v55 = vpop.f32.mrf.mxu0  ;;  %v1691_v47 = vpop.f32.mrf.mxu1  ;;  %v1446_v49 = vld [vmem:[#allocation3 + $0xa0] sm:$0xff] }
 0x3f3   : > { %1759 = vst [vmem:[#allocation3] sm:$0xff] %v1727_v39  ;;  %1775 = vst [vmem:[#allocation3 + $0x58] sm:$0xff] %v1743_v63  ;;  %v1728_v11 = vadd.f32 %v1651_v55, %v1420_v50  ;;  %v1744_v29 = vadd.f32 %v1691_v47, %v1436_v38  ;;  %v1431_v39 = vld [vmem:[#allocation3 + $0xf0] sm:$0xff]  ;;  %v1447_v63 = vld [vmem:[#allocation3 + $0xf8] sm:$0xff] }
 0x3f4   : > { %v1653_v54 = vpop.f32.mrf.mxu0  ;;  %v1693_v17 = vpop.f32.mrf.mxu1 }
 0x3f5   : > { %1760 = vst [vmem:[#allocation3 + $0xd8] sm:$0xff] %v1728_v11  ;;  %1776 = vst [vmem:[#allocation3 + $0x40] sm:$0xff] %v1744_v29  ;;  %v1729_v34 = vadd.f32 %v1653_v54, %v1421_v46  ;;  %v1745_v10 = vadd.f32 %v1693_v17, %v1437_v13  ;;  %v1432_v11 = vld [vmem:[#allocation3 + $0x8] sm:$0xff]  ;;  %v1448_v29 = vld [vmem:[#allocation3 + $0x20] sm:$0xff] }
 0x3f6   : > { %v1657_v14 = vpop.f32.mrf.mxu0  ;;  %v1697_v12 = vpop.f32.mrf.mxu1 }
 0x3f7   : > { %1761 = vst [vmem:[#allocation3 + $0x18] sm:$0xff] %v1729_v34  ;;  %1777 = vst [vmem:[#allocation3 + $0xc8] sm:$0xff] %v1745_v10  ;;  %v1730_v4 = vadd.f32 %v1657_v14, %v1422_v59  ;;  %v1746_v22 = vadd.f32 %v1697_v12, %v1438_v18  ;;  %v1433_v34 = vld [vmem:[#allocation3 + $0x78] sm:$0xff] }
 0x3f8   : > { %v1659_v6 = vpop.f32.mrf.mxu0  ;;  %v1699_v30 = vpop.f32.mrf.mxu1  ;;  %v1449_v10 = vld [vmem:[#allocation3 + $0x98] sm:$0xff] }
 0x3f9   : > { %1762 = vst [vmem:[#allocation3 + $0x50] sm:$0xff] %v1730_v4  ;;  %1778 = vst [vmem:[#allocation3 + $0xe0] sm:$0xff] %v1746_v22  ;;  %v1731_v24 = vadd.f32 %v1659_v6, %v1423_v3  ;;  %v1747_v52 = vadd.f32 %v1699_v30, %v1439_v48 }
 0x3fa   : > { %v1661_v15 = vpop.f32.mrf.mxu0  ;;  %v1701_v35 = vpop.f32.mrf.mxu1 }
 0x3fb   : > { %1763 = vst [vmem:[#allocation3 + $0x68] sm:$0xff] %v1731_v24  ;;  %1779 = vst [vmem:[#allocation3 + $0x90] sm:$0xff] %v1747_v52  ;;  %v1732_v62 = vadd.f32 %v1661_v15, %v1424_v8  ;;  %v1748_v19 = vadd.f32 %v1701_v35, %v1440_v58 }
 0x3fc   : > { %v1663_v21 = vpop.f32.mrf.mxu0  ;;  %v1703_v37 = vpop.f32.mrf.mxu1 }
 0x3fd   : > { %1764 = vst [vmem:[#allocation3 + $0x30] sm:$0xff] %v1732_v62  ;;  %1780 = vst [vmem:[#allocation3 + $0x70] sm:$0xff] %v1748_v19  ;;  %v1733_v0 = vadd.f32 %v1663_v21, %v1425_v5  ;;  %v1749_v57 = vadd.f32 %v1703_v37, %v1441_v2 }
 0x3fe   : > { %v1667_v27 = vpop.f32.mrf.mxu0  ;;  %v1707_v41 = vpop.f32.mrf.mxu1 }
 0x3ff   : > { %1765 = vst [vmem:[#allocation3 + $0x48] sm:$0xff] %v1733_v0  ;;  %1781 = vst [vmem:[#allocation3 + $0xc0] sm:$0xff] %v1749_v57  ;;  %v1734_v32 = vadd.f32 %v1667_v27, %v1426_v20  ;;  %v1750_v7 = vadd.f32 %v1707_v41, %v1442_v28 }
 0x400   : > { %v1669_v42 = vpop.f32.mrf.mxu0  ;;  %v1709_v23 = vpop.f32.mrf.mxu1 }
 0x401   : > { %1766 = vst [vmem:[#allocation3 + $0x80] sm:$0xff] %v1734_v32  ;;  %1782 = vst [vmem:[#allocation3 + $0xa8] sm:$0xff] %v1750_v7  ;;  %v1735_v51 = vadd.f32 %v1669_v42, %v1427_v53  ;;  %v1751_v1 = vadd.f32 %v1709_v23, %v1443_v9 }
 0x402   : > { %v1671_v44 = vpop.f32.mrf.mxu0  ;;  %v1711_v33 = vpop.f32.mrf.mxu1 }
 0x403   : > { %1767 = vst [vmem:[#allocation3 + $0x88] sm:$0xff] %v1735_v51  ;;  %1783 = vst [vmem:[#allocation3 + $0xd0] sm:$0xff] %v1751_v1  ;;  %v1736_v40 = vadd.f32 %v1671_v44, %v1428_v26  ;;  %v1752_v60 = vadd.f32 %v1711_v33, %v1444_v16 }
 0x404   : > { %v1673_v25 = vpop.f32.mrf.mxu0  ;;  %v1713_v43 = vpop.f32.mrf.mxu1 }
 0x405   : > { %1768 = vst [vmem:[#allocation3 + $0xe8] sm:$0xff] %v1736_v40  ;;  %1784 = vst [vmem:[#allocation3 + $0x10] sm:$0xff] %v1752_v60  ;;  %v1737_v56 = vadd.f32 %v1673_v25, %v1429_v45  ;;  %v1753_v36 = vadd.f32 %v1713_v43, %v1445_v61 }
 0x406   : > { %v1677_v50 = vpop.f32.mrf.mxu0  ;;  %v1717_v38 = vpop.f32.mrf.mxu1 }
 0x407   : > { %1769 = vst [vmem:[#allocation3 + $0xb8] sm:$0xff] %v1737_v56  ;;  %1785 = vst [vmem:[#allocation3 + $0x28] sm:$0xff] %v1753_v36  ;;  %v1738_v55 = vadd.f32 %v1677_v50, %v1430_v31  ;;  %v1754_v47 = vadd.f32 %v1717_v38, %v1446_v49 }
 0x408   : > { %v1679_v46 = vpop.f32.mrf.mxu0  ;;  %v1719_v13 = vpop.f32.mrf.mxu1 }
 0x409   : > { %1770 = vst [vmem:[#allocation3 + $0x60] sm:$0xff] %v1738_v55  ;;  %1786 = vst [vmem:[#allocation3 + $0xa0] sm:$0xff] %v1754_v47  ;;  %v1739_v54 = vadd.f32 %v1679_v46, %v1431_v39  ;;  %v1755_v17 = vadd.f32 %v1719_v13, %v1447_v63 }
 0x40a   : > { %v1681_v59 = vpop.f32.mrf.mxu0  ;;  %v1721_v18 = vpop.f32.mrf.mxu1 }
 0x40b   : > { %1771 = vst [vmem:[#allocation3 + $0xf0] sm:$0xff] %v1739_v54  ;;  %1787 = vst [vmem:[#allocation3 + $0xf8] sm:$0xff] %v1755_v17  ;;  %v1740_v14 = vadd.f32 %v1681_v59, %v1432_v11  ;;  %v1756_v12 = vadd.f32 %v1721_v18, %v1448_v29  ;;  %1793 = sbr.rel (%p2520_p1) target bundleno = 1400 (0x578), region = 60 }
 0x40c   : > { %v1683_v3 = vpop.f32.mrf.mxu0  ;;  %v1723_v48 = vpop.f32.mrf.mxu1 }
 0x40d   : > { %1772 = vst [vmem:[#allocation3 + $0x8] sm:$0xff] %v1740_v14  ;;  %1788 = vst [vmem:[#allocation3 + $0x20] sm:$0xff] %v1756_v12  ;;  %v1741_v4 = vadd.f32 %v1683_v3, %v1433_v34  ;;  %v1757_v22 = vadd.f32 %v1723_v48, %v1449_v10 }
 0x40f   : > { %1773 = vst [vmem:[#allocation3 + $0x78] sm:$0xff] %v1741_v4  ;;  %1789 = vst [vmem:[#allocation3 + $0x98] sm:$0xff] %v1757_v22 }
 0x410   : > { %v1829_v6 = vlaneseq  ;;  %v1827_v8 = vld [vmem:[#allocation9 + $0x3] ss:$8 sm:$0x3]  ;;  %v1794_v58 = vld [vmem:[#allocation3 + $0xb0] sm:$0xff]  ;;  %v1796_v2 = vld [vmem:[#allocation3 + $0xd8] sm:$0xff] }
 0x411   : > { %v1795_v24 = vld [vmem:[#allocation3] sm:$0xff]  ;;  %v1798_v35 = vld [vmem:[#allocation3 + $0x50] sm:$0xff]  ;;  %v1799_v5 = vld [vmem:[#allocation3 + $0x68] sm:$0xff] }
 0x412   : > { %v1830_v30 = vshrl.u32 %v1829_v6, 7  ;;  %v1797_v21 = vld [vmem:[#allocation3 + $0x18] sm:$0xff]  ;;  %v1800_v37 = vld [vmem:[#allocation3 + $0x30] sm:$0xff]  ;;  %v1801_v20 = vld [vmem:[#allocation3 + $0x48] sm:$0xff] }
 0x413   : > { %v1802_v41 = vld [vmem:[#allocation3 + $0x80] sm:$0xff]  ;;  %v1803_v53 = vld [vmem:[#allocation3 + $0x88] sm:$0xff]  ;;  %v1805_v26 = vld [vmem:[#allocation3 + $0xb8] sm:$0xff] }
 0x414   : > { %v4155_v52 = vsub.s32 0, %v1830_v30  ;;  %v4157_v15 = vsub.s32 1, %v1830_v30  ;;  %v1804_v23 = vld [vmem:[#allocation3 + $0xe8] sm:$0xff]  ;;  %v1806_v60 = vld [vmem:[#allocation3 + $0x60] sm:$0xff]  ;;  %v1807_v25 = vld [vmem:[#allocation3 + $0xf0] sm:$0xff] }
 0x415   : > { %v1808_v43 = vld [vmem:[#allocation3 + $0x8] sm:$0xff]  ;;  %v1810_v63 = vld [vmem:[#allocation3 + $0x38] sm:$0xff]  ;;  %v1812_v47 = vld [vmem:[#allocation3 + $0x40] sm:$0xff] }
 0x416   : > { %v4160_v62 = vrot.slane %v1827_v8, %v4155_v52  ;;  %v4163_v19 = vrot.slane %v1827_v8, %v4157_v15  ;;  %v1809_v31 = vld [vmem:[#allocation3 + $0x78] sm:$0xff]  ;;  %v1813_v46 = vld [vmem:[#allocation3 + $0xc8] sm:$0xff]  ;;  %v1814_v18 = vld [vmem:[#allocation3 + $0xe0] sm:$0xff] }
 0x417   : > { %v1811_v55 = vld [vmem:[#allocation3 + $0x58] sm:$0xff]  ;;  %v1815_v34 = vld [vmem:[#allocation3 + $0x90] sm:$0xff]  ;;  %v1817_v14 = vld [vmem:[#allocation3 + $0xc0] sm:$0xff] }
 0x418   : > { %v4166_v28 = vadd.f32 %v4160_v62, %v1794_v58  ;;  %v4169_v0 = vadd.f32 %v4163_v19, %v1795_v24  ;;  %v4172_v57 = vadd.f32 %v4160_v62, %v1798_v35  ;;  %v4175_v27 = vadd.f32 %v4163_v19, %v1799_v5  ;;  %v1816_v10 = vld [vmem:[#allocation3 + $0x70] sm:$0xff]  ;;  %v1818_v30 = vld [vmem:[#allocation3 + $0xa8] sm:$0xff] }
 0x419   : > { %v4178_v9 = vadd.f32 %v4160_v62, %v1796_v2  ;;  %v4181_v32 = vadd.f32 %v4163_v19, %v1797_v21  ;;  %v4184_v7 = vadd.f32 %v4160_v62, %v1800_v37  ;;  %v4187_v42 = vadd.f32 %v4163_v19, %v1801_v20  ;;  %v1819_v8 = vld [vmem:[#allocation3 + $0xd0] sm:$0xff]  ;;  %v1821_v24 = vld [vmem:[#allocation3 + $0x28] sm:$0xff] }
 0x41a   : > { %v1875_v16 = vadd.f32 %v4169_v0, %v4166_v28  ;;  %v1881_v51 = vadd.f32 %v4175_v27, %v4172_v57  ;;  %v4196_v44 = vadd.f32 %v4160_v62, %v1802_v41  ;;  %v4199_v33 = vadd.f32 %v4163_v19, %v1803_v53  ;;  %v1820_v58 = vld [vmem:[#allocation3 + $0x10] sm:$0xff]  ;;  %v1822_v41 = vld [vmem:[#allocation3 + $0xa0] sm:$0xff]  ;;  %v1823_v53 = vld [vmem:[#allocation3 + $0xf8] sm:$0xff] }
 0x41b   : > { %v1878_v1 = vadd.f32 %v4181_v32, %v4178_v9  ;;  %v1884_v45 = vadd.f32 %v4187_v42, %v4184_v7  ;;  %v4204_v61 = vadd.f32 %v4160_v62, %v1804_v23  ;;  %v4207_v40 = vadd.f32 %v4163_v19, %v1805_v26  ;;  %v1824_v23 = vld [vmem:[#allocation3 + $0x20] sm:$0xff]  ;;  %v1825_v26 = vld [vmem:[#allocation3 + $0x98] sm:$0xff] }
 0x41c   : > { %1876 = vadd.xlane.f32.xlu0 %v1875_v16  ;;  %1882 = vadd.xlane.f32.xlu1 %v1881_v51  ;;  %v1887_v49 = vadd.f32 %v4199_v33, %v4196_v44  ;;  %v4212_v56 = vadd.f32 %v4160_v62, %v1806_v60  ;;  %v4215_v36 = vadd.f32 %v4163_v19, %v1807_v25 }
 0x41d   : > { %v1890_v50 = vadd.f32 %v4207_v40, %v4204_v61  ;;  %v4220_v38 = vadd.f32 %v4160_v62, %v1808_v43  ;;  %v4223_v39 = vadd.f32 %v4163_v19, %v1809_v31  ;;  %v4228_v11 = vadd.f32 %v4160_v62, %v1810_v63 }
 0x41e   : > { %v1893_v13 = vadd.f32 %v4215_v36, %v4212_v56  ;;  %v4231_v29 = vadd.f32 %v4163_v19, %v1811_v55  ;;  %v4236_v17 = vadd.f32 %v4160_v62, %v1812_v47  ;;  %v4239_v59 = vadd.f32 %v4163_v19, %v1813_v46 }
 0x41f   : > { %v1896_v54 = vadd.f32 %v4223_v39, %v4220_v38  ;;  %v4242_v12 = vadd.f32 %v4160_v62, %v1814_v18  ;;  %v4245_v3 = vadd.f32 %v4163_v19, %v1815_v34  ;;  %v4248_v48 = vadd.f32 %v4160_v62, %v1816_v10 }
 0x420   : > { %1879 = vadd.xlane.f32.xlu0 %v1878_v1  ;;  %1885 = vadd.xlane.f32.xlu1 %v1884_v45  ;;  %v1899_v4 = vadd.f32 %v4231_v29, %v4228_v11  ;;  %v1902_v22 = vadd.f32 %v4239_v59, %v4236_v17  ;;  %v4255_v6 = vadd.f32 %v4163_v19, %v1817_v14 }
 0x421   : > { %v1905_v35 = vadd.f32 %v4245_v3, %v4242_v12  ;;  %v4260_v5 = vadd.f32 %v4160_v62, %v1818_v30  ;;  %v4263_v2 = vadd.f32 %v4163_v19, %v1819_v8  ;;  %v4268_v37 = vadd.f32 %v4160_v62, %v1820_v58 }
 0x422   : > { %v1908_v21 = vadd.f32 %v4255_v6, %v4248_v48  ;;  %v4271_v20 = vadd.f32 %v4163_v19, %v1821_v24  ;;  %v4276_v51 = vadd.f32 %v4160_v62, %v1822_v41  ;;  %v4279_v1 = vadd.f32 %v4163_v19, %v1823_v53 }
 0x423   : > { %v1911_v16 = vadd.f32 %v4263_v2, %v4260_v5  ;;  %v4284_v60 = vadd.f32 %v4160_v62, %v1824_v23  ;;  %v4287_v25 = vadd.f32 %v4163_v19, %v1825_v26 }
 0x424   : > { %1888 = vadd.xlane.f32.xlu0 %v1887_v49  ;;  %1891 = vadd.xlane.f32.xlu1 %v1890_v50  ;;  %v1914_v45 = vadd.f32 %v4271_v20, %v4268_v37  ;;  %v1917_v43 = vadd.f32 %v4279_v1, %v4276_v51 }
 0x425   : > { %v1920_v31 = vadd.f32 %v4287_v25, %v4284_v60 }
 0x428   : > { %1894 = vadd.xlane.f32.xlu0 %v1893_v13  ;;  %1897 = vadd.xlane.f32.xlu1 %v1896_v54 }
 0x42c   : > { %1900 = vadd.xlane.f32.xlu0 %v1899_v4  ;;  %1903 = vadd.xlane.f32.xlu1 %v1902_v22 }
 0x430   : > { %1906 = vadd.xlane.f32.xlu0 %v1905_v35  ;;  %1909 = vadd.xlane.f32.xlu1 %v1908_v21 }
 0x434   : > { %1912 = vadd.xlane.f32.xlu0 %v1911_v16  ;;  %1915 = vadd.xlane.f32.xlu1 %v1914_v45 }
 0x438   : > { %1918 = vadd.xlane.f32.xlu0 %v1917_v43  ;;  %1921 = vadd.xlane.f32.xlu1 %v1920_v31 }
 0x4a5   : > { %v1877_v49 = vpop.xlane.xlu0 %1876  ;;  %v1883_v50 = vpop.xlane.xlu1 %1882 }
 0x4a6   : > { %v1924_v63 = vmul.f32 0.00390625, %v1877_v49  ;;  %v1926_v55 = vmul.f32 0.00390625, %v1883_v50 }
 0x4a8   : > { %v4294_v62 = vsub.f32 %v4166_v28, %v1924_v63  ;;  %v4297_v19 = vsub.f32 %v4169_v0, %v1924_v63  ;;  %v4300_v47 = vsub.f32 %v4172_v57, %v1926_v55  ;;  %v4303_v46 = vsub.f32 %v4175_v27, %v1926_v55 }
 0x4a9   : > { %v1880_v13 = vpop.xlane.xlu0 %1879  ;;  %v1886_v54 = vpop.xlane.xlu1 %1885 }
 0x4aa   : > { %v1925_v18 = vmul.f32 0.00390625, %v1880_v13  ;;  %v1927_v34 = vmul.f32 0.00390625, %v1886_v54  ;;  %v1972_v10 = vmul.f32 %v4294_v62, %v4294_v62  ;;  %v1973_v28 = vmul.f32 %v4297_v19, %v4297_v19 }
 0x4ab   : > { %v1976_v0 = vmul.f32 %v4300_v47, %v4300_v47  ;;  %v1977_v57 = vmul.f32 %v4303_v46, %v4303_v46 }
 0x4ac   : > { %v4314_v14 = vsub.f32 %v4178_v9, %v1925_v18  ;;  %v4317_v27 = vsub.f32 %v4181_v32, %v1925_v18  ;;  %v4320_v4 = vsub.f32 %v4184_v7, %v1927_v34  ;;  %v4323_v22 = vsub.f32 %v4187_v42, %v1927_v34 }
 0x4ad   : > { %v1889_v30 = vpop.xlane.xlu0 %1888  ;;  %v2004_v8 = vadd.f32 %v1973_v28, %v1972_v10  ;;  %v1892_v58 = vpop.xlane.xlu1 %1891  ;;  %v2010_v32 = vadd.f32 %v1977_v57, %v1976_v0 }
 0x4ae   : > { %v1928_v24 = vmul.f32 0.00390625, %v1889_v30  ;;  %v1929_v35 = vmul.f32 0.00390625, %v1892_v58  ;;  %v1974_v21 = vmul.f32 %v4314_v14, %v4314_v14  ;;  %v1975_v9 = vmul.f32 %v4317_v27, %v4317_v27 }
 0x4af   : > { %2005 = vadd.xlane.f32.xlu0 %v2004_v8  ;;  %v1978_v7 = vmul.f32 %v4320_v4, %v4320_v4  ;;  %v1979_v42 = vmul.f32 %v4323_v22, %v4323_v22 }
 0x4b0   : > { %v4334_v41 = vsub.f32 %v4196_v44, %v1928_v24  ;;  %v4337_v53 = vsub.f32 %v4199_v33, %v1928_v24  ;;  %v4340_v23 = vsub.f32 %v4204_v61, %v1929_v35  ;;  %v4343_v26 = vsub.f32 %v4207_v40, %v1929_v35 }
 0x4b1   : > { %v1895_v16 = vpop.xlane.xlu0 %1894  ;;  %v2007_v45 = vadd.f32 %v1975_v9, %v1974_v21  ;;  %v1898_v43 = vpop.xlane.xlu1 %1897  ;;  %v2013_v33 = vadd.f32 %v1979_v42, %v1978_v7 }
 0x4b2   : > { %v1930_v31 = vmul.f32 0.00390625, %v1895_v16  ;;  %v1931_v49 = vmul.f32 0.00390625, %v1898_v43  ;;  %v1980_v50 = vmul.f32 %v4334_v41, %v4334_v41  ;;  %v1981_v44 = vmul.f32 %v4337_v53, %v4337_v53 }
 0x4b3   : > { %2011 = vadd.xlane.f32.xlu0 %v2010_v32  ;;  %2008 = vadd.xlane.f32.xlu1 %v2007_v45  ;;  %v1982_v61 = vmul.f32 %v4340_v23, %v4340_v23  ;;  %v1983_v40 = vmul.f32 %v4343_v26, %v4343_v26 }
 0x4b4   : > { %v4354_v63 = vsub.f32 %v4212_v56, %v1930_v31  ;;  %v4357_v55 = vsub.f32 %v4215_v36, %v1930_v31  ;;  %v4360_v13 = vsub.f32 %v4220_v38, %v1931_v49  ;;  %v4363_v54 = vsub.f32 %v4223_v39, %v1931_v49 }
 0x4b5   : > { %v1901_v18 = vpop.xlane.xlu0 %1900  ;;  %v2016_v34 = vadd.f32 %v1981_v44, %v1980_v50  ;;  %v1904_v10 = vpop.xlane.xlu1 %1903  ;;  %v2019_v36 = vadd.f32 %v1983_v40, %v1982_v61 }
 0x4b6   : > { %v1932_v28 = vmul.f32 0.00390625, %v1901_v18  ;;  %v1933_v0 = vmul.f32 0.00390625, %v1904_v10  ;;  %v1984_v57 = vmul.f32 %v4354_v63, %v4354_v63  ;;  %v1985_v56 = vmul.f32 %v4357_v55, %v4357_v55 }
 0x4b7   : > { %2014 = vadd.xlane.f32.xlu1 %v2013_v33  ;;  %2017 = vadd.xlane.f32.xlu0 %v2016_v34  ;;  %v1986_v38 = vmul.f32 %v4360_v13, %v4360_v13  ;;  %v1987_v39 = vmul.f32 %v4363_v54, %v4363_v54 }
 0x4b8   : > { %v4374_v30 = vsub.f32 %v4228_v11, %v1932_v28  ;;  %v4377_v8 = vsub.f32 %v4231_v29, %v1932_v28  ;;  %v4380_v58 = vsub.f32 %v4236_v17, %v1933_v0  ;;  %v4383_v24 = vsub.f32 %v4239_v59, %v1933_v0 }
 0x4b9   : > { %v1907_v35 = vpop.xlane.xlu0 %1906  ;;  %v2022_v21 = vadd.f32 %v1985_v56, %v1984_v57  ;;  %v1910_v9 = vpop.xlane.xlu1 %1909  ;;  %v2025_v29 = vadd.f32 %v1987_v39, %v1986_v38 }
 0x4ba   : > { %v1934_v32 = vmul.f32 0.00390625, %v1907_v35  ;;  %v1935_v7 = vmul.f32 0.00390625, %v1910_v9  ;;  %v1988_v42 = vmul.f32 %v4374_v30, %v4374_v30  ;;  %v1989_v11 = vmul.f32 %v4377_v8, %v4377_v8 }
 0x4bb   : > { %2020 = vadd.xlane.f32.xlu1 %v2019_v36  ;;  %2023 = vadd.xlane.f32.xlu0 %v2022_v21  ;;  %v1990_v17 = vmul.f32 %v4380_v58, %v4380_v58  ;;  %v1991_v59 = vmul.f32 %v4383_v24, %v4383_v24 }
 0x4bc   : > { %v4394_v16 = vsub.f32 %v4242_v12, %v1934_v32  ;;  %v4397_v45 = vsub.f32 %v4245_v3, %v1934_v32  ;;  %v4400_v43 = vsub.f32 %v4248_v48, %v1935_v7  ;;  %v4403_v31 = vsub.f32 %v4255_v6, %v1935_v7 }
 0x4bd   : > { %v1913_v49 = vpop.xlane.xlu0 %1912  ;;  %v2028_v50 = vadd.f32 %v1989_v11, %v1988_v42  ;;  %v1916_v44 = vpop.xlane.xlu1 %1915  ;;  %v2031_v3 = vadd.f32 %v1991_v59, %v1990_v17 }
 0x4be   : > { %v1936_v33 = vmul.f32 0.00390625, %v1913_v49  ;;  %v1937_v61 = vmul.f32 0.00390625, %v1916_v44  ;;  %v1992_v40 = vmul.f32 %v4394_v16, %v4394_v16  ;;  %v1993_v12 = vmul.f32 %v4397_v45, %v4397_v45 }
 0x4bf   : > { %2026 = vadd.xlane.f32.xlu1 %v2025_v29  ;;  %2029 = vadd.xlane.f32.xlu0 %v2028_v50  ;;  %v1994_v48 = vmul.f32 %v4400_v43, %v4400_v43  ;;  %v1995_v6 = vmul.f32 %v4403_v31, %v4403_v31 }
 0x4c0   : > { %v4414_v18 = vsub.f32 %v4260_v5, %v1936_v33  ;;  %v4417_v34 = vsub.f32 %v4263_v2, %v1936_v33  ;;  %v4420_v10 = vsub.f32 %v4268_v37, %v1937_v61  ;;  %v4423_v28 = vsub.f32 %v4271_v20, %v1937_v61 }
 0x4c1   : > { %v1919_v0 = vpop.xlane.xlu0 %1918  ;;  %v2034_v57 = vadd.f32 %v1993_v12, %v1992_v40  ;;  %v1922_v56 = vpop.xlane.xlu1 %1921  ;;  %v2037_v2 = vadd.f32 %v1995_v6, %v1994_v48 }
 0x4c2   : > { %v1938_v36 = vmul.f32 0.00390625, %v1919_v0  ;;  %v1939_v38 = vmul.f32 0.00390625, %v1922_v56  ;;  %v1996_v39 = vmul.f32 %v4414_v18, %v4414_v18  ;;  %v1997_v5 = vmul.f32 %v4417_v34, %v4417_v34 }
 0x4c3   : > { %2032 = vadd.xlane.f32.xlu1 %v2031_v3  ;;  %2035 = vadd.xlane.f32.xlu0 %v2034_v57  ;;  %v1998_v37 = vmul.f32 %v4420_v10, %v4420_v10  ;;  %v1999_v20 = vmul.f32 %v4423_v28, %v4423_v28 }
 0x4c4   : > { %v4434_v35 = vsub.f32 %v4276_v51, %v1938_v36  ;;  %v4437_v21 = vsub.f32 %v4279_v1, %v1938_v36  ;;  %v4440_v9 = vsub.f32 %v4284_v60, %v1939_v38  ;;  %v4443_v32 = vsub.f32 %v4287_v25, %v1939_v38 }
 0x4c5   : > { %v2040_v7 = vadd.f32 %v1997_v5, %v1996_v39  ;;  %v2043_v51 = vadd.f32 %v1999_v20, %v1998_v37  ;;  %v1872_v39 = vld [vmem:[#allocation9 + $0x4] ss:$8 sm:$0x3]  ;;  %v1874_v37 = vld [vmem:[#allocation9 + $0x5] ss:$8 sm:$0x3] }
 0x4c6   : > { %v2000_v42 = vmul.f32 %v4434_v35, %v4434_v35  ;;  %v2001_v11 = vmul.f32 %v4437_v21, %v4437_v21  ;;  %v2002_v1 = vmul.f32 %v4440_v9, %v4440_v9  ;;  %v2003_v60 = vmul.f32 %v4443_v32, %v4443_v32 }
 0x4c7   : > { %2038 = vadd.xlane.f32.xlu1 %v2037_v2  ;;  %2041 = vadd.xlane.f32.xlu0 %v2040_v7 }
 0x4c8   : > { %v2046_v29 = vadd.f32 %v2001_v11, %v2000_v42  ;;  %v2049_v25 = vadd.f32 %v2003_v60, %v2002_v1  ;;  %v4454_v42 = vrot.slane %v1872_v39, %v4155_v52  ;;  %v4457_v1 = vrot.slane %v1872_v39, %v4157_v15 }
 0x4cb   : > { %2044 = vadd.xlane.f32.xlu1 %v2043_v51  ;;  %2047 = vadd.xlane.f32.xlu0 %v2046_v29 }
 0x4cf   : > { %2050 = vadd.xlane.f32.xlu1 %v2049_v25 }
 0x538   : > { %v2006_v17 = vpop.xlane.xlu0 %2005 }
 0x539   : > { %v2052_v59 = vmul.f32 0.00390625, %v2006_v17  ;;  %v4460_v17 = vrot.slane %v1874_v37, %v4155_v52 }
 0x53b   : > { %v2068_v49 = vadd.f32 1e-05, %v2052_v59  ;;  %v4463_v59 = vrot.slane %v1874_v37, %v4157_v15 }
 0x53c   : > { %v2009_v50 = vpop.xlane.xlu1 %2008  ;;  %v2012_v44 = vpop.xlane.xlu0 %2011 }
 0x53d   : > { %3042 = vrsqrt.f32 %v2068_v49  ;;  %v2053_v33 = vmul.f32 0.00390625, %v2009_v50  ;;  %v2054_v61 = vmul.f32 0.00390625, %v2012_v44 }
 0x53f   : > { %v2069_v40 = vadd.f32 1e-05, %v2053_v33  ;;  %v2070_v12 = vadd.f32 1e-05, %v2054_v61 }
 0x540   : > { %v2015_v3 = vpop.xlane.xlu1 %2014  ;;  %v2018_v48 = vpop.xlane.xlu0 %2017 }
 0x541   : > { %3044 = vrsqrt.f32 %v2069_v40  ;;  %v2055_v6 = vmul.f32 0.00390625, %v2015_v3  ;;  %v2056_v0 = vmul.f32 0.00390625, %v2018_v48 }
 0x542   : > { %3046 = vrsqrt.f32 %v2070_v12 }
 0x543   : > { %v2071_v57 = vadd.f32 1e-05, %v2055_v6  ;;  %v2072_v56 = vadd.f32 1e-05, %v2056_v0 }
 0x544   : > { %v2021_v36 = vpop.xlane.xlu1 %2020  ;;  %v2024_v38 = vpop.xlane.xlu0 %2023 }
 0x545   : > { %3048 = vrsqrt.f32 %v2071_v57  ;;  %v2057_v5 = vmul.f32 0.00390625, %v2021_v36  ;;  %v2058_v2 = vmul.f32 0.00390625, %v2024_v38 }
 0x546   : > { %3050 = vrsqrt.f32 %v2072_v56 }
 0x547   : > { %v2073_v20 = vadd.f32 1e-05, %v2057_v5  ;;  %v2074_v7 = vadd.f32 1e-05, %v2058_v2 }
 0x548   : > { %v2027_v11 = vpop.xlane.xlu1 %2026  ;;  %v2030_v51 = vpop.xlane.xlu0 %2029 }
 0x549   : > { %3052 = vrsqrt.f32 %v2073_v20  ;;  %v2059_v60 = vmul.f32 0.00390625, %v2027_v11  ;;  %v2060_v29 = vmul.f32 0.00390625, %v2030_v51 }
 0x54a   : > { %v3043_v25 = vpop.eup %3042  ;;  %3054 = vrsqrt.f32 %v2074_v7 }
 0x54b   : > { %v2100_v49 = vmul.f32 %v3043_v25, %v4294_v62  ;;  %v2101_v50 = vmul.f32 %v3043_v25, %v4297_v19  ;;  %v2075_v44 = vadd.f32 1e-05, %v2059_v60  ;;  %v2076_v33 = vadd.f32 1e-05, %v2060_v29 }
 0x54c   : > { %v2033_v61 = vpop.xlane.xlu1 %2032  ;;  %v2036_v40 = vpop.xlane.xlu0 %2035 }
 0x54d   : > { %v2143_v12 = vmul.f32 %v4454_v42, %v2100_v49  ;;  %v2144_v3 = vmul.f32 %v4457_v1, %v2101_v50  ;;  %3056 = vrsqrt.f32 %v2075_v44  ;;  %v2061_v52 = vmul.f32 0.00390625, %v2033_v61 }
 0x54e   : > { %v3045_v48 = vpop.eup %3044  ;;  %3058 = vrsqrt.f32 %v2076_v33  ;;  %v2062_v15 = vmul.f32 0.00390625, %v2036_v40 }
 0x54f   : > { %v3047_v6 = vpop.eup %3046  ;;  %v2186_v62 = vadd.f32 %v4460_v17, %v2143_v12  ;;  %v2187_v19 = vadd.f32 %v4463_v59, %v2144_v3  ;;  %v2102_v0 = vmul.f32 %v3045_v48, %v4314_v14  ;;  %v2103_v57 = vmul.f32 %v3045_v48, %v4317_v27 }
 0x550   : > { %v2104_v56 = vmul.f32 %v3047_v6, %v4300_v47  ;;  %v2105_v36 = vmul.f32 %v3047_v6, %v4303_v46  ;;  %v2077_v38 = vadd.f32 1e-05, %v2061_v52  ;;  %v2039_v39 = vpop.xlane.xlu1 %2038  ;;  %v2042_v5 = vpop.xlane.xlu0 %2041  ;;  %v2078_v20 = vadd.f32 1e-05, %v2062_v15 }
 0x551   : > { %2218 = vst [vmem:[%s3571_s1] sm:$0xff] %v2186_v62  ;;  %2219 = vst [vmem:[%s3571_s1 + $0x8] sm:$0xff] %v2187_v19  ;;  %v2145_v2 = vmul.f32 %v4454_v42, %v2102_v0  ;;  %v2146_v37 = vmul.f32 %v4457_v1, %v2103_v57  ;;  %v2063_v7 = vmul.f32 0.00390625, %v2039_v39  ;;  %v2064_v46 = vmul.f32 0.00390625, %v2042_v5 }
 0x552   : > { %v3049_v11 = vpop.eup %3048  ;;  %v2147_v14 = vmul.f32 %v4454_v42, %v2104_v56  ;;  %v2148_v47 = vmul.f32 %v4457_v1, %v2105_v36  ;;  %3060 = vrsqrt.f32 %v2077_v38 }
 0x553   : > { %v3051_v27 = vpop.eup %3050  ;;  %v2188_v51 = vadd.f32 %v4460_v17, %v2145_v2  ;;  %v2189_v60 = vadd.f32 %v4463_v59, %v2146_v37  ;;  %v2106_v29 = vmul.f32 %v3049_v11, %v4320_v4  ;;  %v2107_v25 = vmul.f32 %v3049_v11, %v4323_v22 }
 0x554   : > { %v2190_v49 = vadd.f32 %v4460_v17, %v2147_v14  ;;  %v2191_v50 = vadd.f32 %v4463_v59, %v2148_v47  ;;  %v2108_v44 = vmul.f32 %v3051_v27, %v4334_v41  ;;  %v2109_v33 = vmul.f32 %v3051_v27, %v4337_v53  ;;  %v2045_v61 = vpop.xlane.xlu1 %2044  ;;  %v2048_v0 = vpop.xlane.xlu0 %2047 }
 0x555   : > { %2220 = vst [vmem:[%s3571_s1 + $0x10] sm:$0xff] %v2188_v51  ;;  %2221 = vst [vmem:[%s3571_s1 + $0x18] sm:$0xff] %v2189_v60  ;;  %v2149_v40 = vmul.f32 %v4454_v42, %v2106_v29  ;;  %v2150_v12 = vmul.f32 %v4457_v1, %v2107_v25  ;;  %3062 = vrsqrt.f32 %v2078_v20  ;;  %v2079_v3 = vadd.f32 1e-05, %v2063_v7 }
 0x556   : > { %v3053_v4 = vpop.eup %3052  ;;  %2222 = vst [vmem:[%s3571_s1 + $0x20] sm:$0xff] %v2190_v49  ;;  %2223 = vst [vmem:[%s3571_s1 + $0x28] sm:$0xff] %v2191_v50  ;;  %v2151_v22 = vmul.f32 %v4454_v42, %v2108_v44  ;;  %v2152_v41 = vmul.f32 %v4457_v1, %v2109_v33  ;;  %v2080_v52 = vadd.f32 1e-05, %v2064_v46  ;;  %v2065_v53 = vmul.f32 0.00390625, %v2045_v61 }
 0x557   : > { %v3055_v48 = vpop.eup %3054  ;;  %v2192_v15 = vadd.f32 %v4460_v17, %v2149_v40  ;;  %v2193_v6 = vadd.f32 %v4463_v59, %v2150_v12  ;;  %v2110_v62 = vmul.f32 %v3053_v4, %v4340_v23  ;;  %v2111_v19 = vmul.f32 %v3053_v4, %v4343_v26 }
 0x558   : > { %v2194_v57 = vadd.f32 %v4460_v17, %v2151_v22  ;;  %v2195_v56 = vadd.f32 %v4463_v59, %v2152_v41  ;;  %v2112_v36 = vmul.f32 %v3055_v48, %v4354_v63  ;;  %v2113_v38 = vmul.f32 %v3055_v48, %v4357_v55  ;;  %v2051_v47 = vpop.xlane.xlu1 %2050 }
 0x559   : > { %2224 = vst [vmem:[%s3571_s1 + $0x30] sm:$0xff] %v2192_v15  ;;  %2225 = vst [vmem:[%s3571_s1 + $0x38] sm:$0xff] %v2193_v6  ;;  %v2153_v39 = vmul.f32 %v4454_v42, %v2110_v62  ;;  %v2154_v5 = vmul.f32 %v4457_v1, %v2111_v19  ;;  %3064 = vrsqrt.f32 %v2079_v3  ;;  %v2081_v2 = vadd.f32 1e-05, %v2065_v53 }
 0x55a   : > { %v3057_v23 = vpop.eup %3056  ;;  %2226 = vst [vmem:[%s3571_s1 + $0x40] sm:$0xff] %v2194_v57  ;;  %2227 = vst [vmem:[%s3571_s1 + $0x48] sm:$0xff] %v2195_v56  ;;  %v2155_v26 = vmul.f32 %v4454_v42, %v2112_v36  ;;  %v2156_v37 = vmul.f32 %v4457_v1, %v2113_v38  ;;  %3066 = vrsqrt.f32 %v2080_v52  ;;  %v2066_v63 = vmul.f32 0.00390625, %v2048_v0 }
 0x55b   : > { %v3059_v55 = vpop.eup %3058  ;;  %v2196_v20 = vadd.f32 %v4460_v17, %v2153_v39  ;;  %v2197_v7 = vadd.f32 %v4463_v59, %v2154_v5  ;;  %v2114_v11 = vmul.f32 %v3057_v23, %v4360_v13  ;;  %v2115_v14 = vmul.f32 %v3057_v23, %v4363_v54 }
 0x55c   : > { %v2198_v46 = vadd.f32 %v4460_v17, %v2155_v26  ;;  %v2199_v27 = vadd.f32 %v4463_v59, %v2156_v37  ;;  %v2116_v51 = vmul.f32 %v3059_v55, %v4374_v30  ;;  %v2117_v60 = vmul.f32 %v3059_v55, %v4377_v8 }
 0x55d   : > { %2228 = vst [vmem:[%s3571_s1 + $0x50] sm:$0xff] %v2196_v20  ;;  %2229 = vst [vmem:[%s3571_s1 + $0x58] sm:$0xff] %v2197_v7  ;;  %v2157_v29 = vmul.f32 %v4454_v42, %v2114_v11  ;;  %v2158_v25 = vmul.f32 %v4457_v1, %v2115_v14  ;;  %3068 = vrsqrt.f32 %v2081_v2  ;;  %v2082_v13 = vadd.f32 1e-05, %v2066_v63 }
 0x55e   : > { %2230 = vst [vmem:[%s3571_s1 + $0x60] sm:$0xff] %v2198_v46  ;;  %2231 = vst [vmem:[%s3571_s1 + $0x68] sm:$0xff] %v2199_v27  ;;  %v2159_v54 = vmul.f32 %v4454_v42, %v2116_v51  ;;  %v2160_v30 = vmul.f32 %v4457_v1, %v2117_v60  ;;  %v2067_v49 = vmul.f32 0.00390625, %v2051_v47 }
 0x55f   : > { %v3061_v8 = vpop.eup %3060  ;;  %v2200_v50 = vadd.f32 %v4460_v17, %v2157_v29  ;;  %v2201_v44 = vadd.f32 %v4463_v59, %v2158_v25  ;;  %3070 = vrsqrt.f32 %v2082_v13 }
 0x560   : > { %v2202_v33 = vadd.f32 %v4460_v17, %v2159_v54  ;;  %v2203_v61 = vadd.f32 %v4463_v59, %v2160_v30  ;;  %v2118_v40 = vmul.f32 %v3061_v8, %v4380_v58  ;;  %v2119_v12 = vmul.f32 %v3061_v8, %v4383_v24 }
 0x561   : > { %2232 = vst [vmem:[%s3571_s1 + $0x70] sm:$0xff] %v2200_v50  ;;  %2233 = vst [vmem:[%s3571_s1 + $0x78] sm:$0xff] %v2201_v44  ;;  %v2083_v3 = vadd.f32 1e-05, %v2067_v49 }
 0x562   : > { %v3063_v4 = vpop.eup %3062  ;;  %2234 = vst [vmem:[%s3571_s1 + $0x80] sm:$0xff] %v2202_v33  ;;  %2235 = vst [vmem:[%s3571_s1 + $0x88] sm:$0xff] %v2203_v61  ;;  %v2161_v22 = vmul.f32 %v4454_v42, %v2118_v40  ;;  %v2162_v41 = vmul.f32 %v4457_v1, %v2119_v12 }
 0x563   : > { %v2120_v52 = vmul.f32 %v3063_v4, %v4394_v16  ;;  %v2121_v53 = vmul.f32 %v3063_v4, %v4397_v45  ;;  %3072 = vrsqrt.f32 %v2083_v3 }
 0x564   : > { %v2204_v58 = vadd.f32 %v4460_v17, %v2161_v22  ;;  %v2205_v24 = vadd.f32 %v4463_v59, %v2162_v41 }
 0x565   : > { %v2163_v48 = vmul.f32 %v4454_v42, %v2120_v52  ;;  %v2164_v15 = vmul.f32 %v4457_v1, %v2121_v53 }
 0x566   : > { %v3065_v6 = vpop.eup %3064  ;;  %2236 = vst [vmem:[%s3571_s1 + $0x90] sm:$0xff] %v2204_v58  ;;  %2237 = vst [vmem:[%s3571_s1 + $0x98] sm:$0xff] %v2205_v24 }
 0x567   : > { %v3067_v62 = vpop.eup %3066  ;;  %v2206_v19 = vadd.f32 %v4460_v17, %v2163_v48  ;;  %v2207_v16 = vadd.f32 %v4463_v59, %v2164_v15  ;;  %v2122_v45 = vmul.f32 %v3065_v6, %v4400_v43  ;;  %v2123_v0 = vmul.f32 %v3065_v6, %v4403_v31 }
 0x568   : > { %v2124_v57 = vmul.f32 %v3067_v62, %v4414_v18  ;;  %v2125_v56 = vmul.f32 %v3067_v62, %v4417_v34 }
 0x569   : > { %2238 = vst [vmem:[%s3571_s1 + $0xa0] sm:$0xff] %v2206_v19  ;;  %2239 = vst [vmem:[%s3571_s1 + $0xa8] sm:$0xff] %v2207_v16  ;;  %v2165_v36 = vmul.f32 %v4454_v42, %v2122_v45  ;;  %v2166_v38 = vmul.f32 %v4457_v1, %v2123_v0 }
 0x56a   : > { %v3069_v39 = vpop.eup %3068  ;;  %v2167_v5 = vmul.f32 %v4454_v42, %v2124_v57  ;;  %v2168_v43 = vmul.f32 %v4457_v1, %v2125_v56 }
 0x56b   : > { %v2208_v31 = vadd.f32 %v4460_v17, %v2165_v36  ;;  %v2209_v18 = vadd.f32 %v4463_v59, %v2166_v38  ;;  %v2126_v34 = vmul.f32 %v3069_v39, %v4420_v10  ;;  %v2127_v2 = vmul.f32 %v3069_v39, %v4423_v28 }
 0x56c   : > { %v3071_v23 = vpop.eup %3070  ;;  %v2210_v26 = vadd.f32 %v4460_v17, %v2167_v5  ;;  %v2211_v37 = vadd.f32 %v4463_v59, %v2168_v43 }
 0x56d   : > { %2240 = vst [vmem:[%s3571_s1 + $0xb0] sm:$0xff] %v2208_v31  ;;  %2241 = vst [vmem:[%s3571_s1 + $0xb8] sm:$0xff] %v2209_v18  ;;  %v2169_v63 = vmul.f32 %v4454_v42, %v2126_v34  ;;  %v2170_v55 = vmul.f32 %v4457_v1, %v2127_v2  ;;  %v2128_v20 = vmul.f32 %v3071_v23, %v4434_v35 }
 0x56e   : > { %v2129_v10 = vmul.f32 %v3071_v23, %v4437_v21  ;;  %2242 = vst [vmem:[%s3571_s1 + $0xc0] sm:$0xff] %v2210_v26  ;;  %2243 = vst [vmem:[%s3571_s1 + $0xc8] sm:$0xff] %v2211_v37 }
 0x56f   : > { %v2212_v28 = vadd.f32 %v4460_v17, %v2169_v63  ;;  %v2213_v7 = vadd.f32 %v4463_v59, %v2170_v55  ;;  %v2171_v11 = vmul.f32 %v4454_v42, %v2128_v20 }
 0x570   : > { %v2172_v14 = vmul.f32 %v4457_v1, %v2129_v10  ;;  %v3073_v47 = vpop.eup %3072 }
 0x571   : > { %2244 = vst [vmem:[%s3571_s1 + $0xd0] sm:$0xff] %v2212_v28  ;;  %2245 = vst [vmem:[%s3571_s1 + $0xd8] sm:$0xff] %v2213_v7  ;;  %v2214_v35 = vadd.f32 %v4460_v17, %v2171_v11  ;;  %v2130_v21 = vmul.f32 %v3073_v47, %v4440_v9  ;;  %v2131_v27 = vmul.f32 %v3073_v47, %v4443_v32 }
 0x572   : > { %v2215_v46 = vadd.f32 %v4463_v59, %v2172_v14 }
 0x573   : > { %2246 = vst [vmem:[%s3571_s1 + $0xe0] sm:$0xff] %v2214_v35  ;;  %v2173_v51 = vmul.f32 %v4454_v42, %v2130_v21  ;;  %v2174_v60 = vmul.f32 %v4457_v1, %v2131_v27 }
 0x574   : > { %2247 = vst [vmem:[%s3571_s1 + $0xe8] sm:$0xff] %v2215_v46 }
 0x575   : > { %v2216_v29 = vadd.f32 %v4460_v17, %v2173_v51  ;;  %v2217_v25 = vadd.f32 %v4463_v59, %v2174_v60 }
 0x577   : > { %2248 = vst [vmem:[%s3571_s1 + $0xf0] sm:$0xff] %v2216_v29  ;;  %2249 = vst [vmem:[%s3571_s1 + $0xf8] sm:$0xff] %v2217_v25 }
 0x578 PF: > { %s4709_s21 = sld [smem:[#allocation18_spill]]  ;;  %s2265_s27 = sshll.u32 %s3571_s1, 4  ;;  %s4600_s27 = int_to_ptr.vmem [resolvable:$true] %s2265_s27 }
 0x579   : > { %s4710_s14 = sld [smem:[#allocation20_spill]]  ;;  %s2251_s13 = scalar_lea.sflag [#allocation6], %s3549_s6 }
 0x57a   : > { %s4711_s0 = sld [smem:[#allocation25_spill]]  ;;  %s3182_s15 = scalar_lea.vmem %s4600_s27, 4096 }
 0x57b   : > { %p3183_p2 = scmp.ne.s32.totalorder %s4600_s27, %s3182_s15  ;;  %s3320_s29 = smov [#allocation12]  }
 0x57c   : > { %s3186_s4 = sshll.u32 %s3320_s29, 4  ;;  %s3187_s4 = int_to_ptr.vmem [resolvable:$false] %s3186_s4 }
 0x57d   : > { %s3188_s7 = scalar_lea.vmem %s3187_s4, 8192  ;;  %p3189_p13 = scmp.lt.s32.totalorder %s4600_s27, %s3187_s4 }
 0x57e   : > { %s2565_s10 = sshll.u32 %s4709_s21, 12  ;;  %p3190_p6 = scmp.lt.s32.totalorder %s3188_s7, %s3182_s15 }
 0x57f   : > { %p4712_p8 = scmp.ne.s32.totalorder %s4710_s14, 0 }
 0x580   : > { %s4597_s18 = scalar_lea.hbm %s4711_s0, %s2565_s10  ;;  %p3191_p0 = por %p3190_p6, %p3189_p13 }
 0x581   : > { %p3184_p9 = pnand %p3183_p2, %p4712_p8 }
 0x583   : > { %p3185_p11 = pneg %p3184_p9 }
 0x585   : > { %p3192_p7 = pnand %p3191_p0, %p3185_p11 }
 0x587   : > { %3195 = shalt.err (!%p3192_p7)
}
 0x588   : > { %s3196_s8 = scalar_lea.hbm %s4597_s18, 4096  ;;  %s3200_s1 = scalar_lea.hbm %s4711_s0, 8192 }
 0x589   : > { %p3197_p12 = scmp.ne.s32.totalorder %s4597_s18, %s3196_s8  ;;  %p3201_p10 = scmp.lt.s32.totalorder %s4597_s18, %s4711_s0 }
 0x58a   : > { %p3202_p4 = scmp.lt.s32.totalorder %s3200_s1, %s3196_s8 }
 0x58b   : > { %p3198_p3 = pnand %p3197_p12, %p4712_p8 }
 0x58c   : > { %p3203_p1 = por %p3202_p4, %p3201_p10 }
 0x58d   : > { %p3199_p5 = pneg %p3198_p3 }
 0x58f   : > { %p3204_p2 = pnand %p3203_p1, %p3199_p5 }
 0x591   : > { %3207 = shalt.err (!%p3204_p2)
}
 0x592   : > { %s3321_s21 = smov 256   ;;  %s3322_s10 = smov 16  }
 0x593   : > { %2720 = dma.vmem_to_hbm [thread:$0]  (%p4712_p8), %s4600_s27, 4096, %s4597_s18, %s2251_s13, %s3321_s21, %s3321_s21, %s3322_s10  }
 0x594 PF: > { %s4713_s2 = sld [smem:[#allocation17_spill]]  ;;  %p2745_p9 = scmp.ge.s32.totalorder %s3310_s25, 2 }
 0x595   : > { %s4714_s12 = sld [smem:[#allocation19_spill]] }
 0x59a   : > { %s2280_s15 = sand.u32 1, %s4713_s2  }
 0x59b   : > { %p4715_p11 = scmp.ne.s32.totalorder %s4714_s12, 0  ;;  %s2281_s29 = scalar_lea.sflag [#allocation6], %s2280_s15 }
 0x59d   : > { %p2737_p13 = pnand %p2745_p9, %p4715_p11 }
 0x59f   : > { %p2738_p6 = pneg %p2737_p13 }
 0x5a1   : > { %3265 = dma.done.wait (%p2738_p6), %s2281_s29, 4096  }
 0x5a2   : > { %3267 = vsyncadd (%p2738_p6), %s2281_s29, 4294963200  ;;  %s24_s25 = sadd.s32 1, %s3310_s25   ;;  %s4716_s6 = sld [smem:[#allocation21_spill]] }
 0x5a3   : > { %p21_p0 = scmp.ge.s32.totalorder %s24_s25, 6   ;;  %s4717_s15 = smov %s3274_s16 }
 0x5a4   : > { %s4718_s16 = smov %s3278_s17  ;;  %s4719_s17 = smov %s3518_s9 }
 0x5a5   : > { %s4720_s18 = smov %s3286_s19  ;;  %s4721_s19 = smov %s3290_s20 }
 0x5a6   : > { %s4722_s20 = smov %s3529_s22  ;;  %s4723_s21 = smov %s3302_s23 }
 0x5a7   : > { %s4724_s22 = smov %s3306_s24  ;;  %s4726_s24 = smov %s4732_s26 }
 0x5a8   : > { %s4725_s23 = smov %s4716_s6  ;;  %23 = sbr.rel (!%p21_p0) target bundleno = 17 (0x11), region = 117 }
 0x5ad   :  { %2286 = vsyncpa [#allocation5], 1 }
 0x5ae   :  { %2288 = vsyncpa [#allocation5 + $0x1], 1 }
 0x5af   :  { %2289 = vsyncpa [#allocation8], 1 }
 0x5b0   :  { %2290 = vsyncpa [#allocation11], 1 }
 0x5b1   :  { %2292 = vsyncpa [#allocation11 + $0x1], 1 }
 0x5b2   :  { %2293 = vsyncpa [#allocation6], 1 }
 0x5b3   :  { %2295 = vsyncpa [#allocation6 + $0x1], 1 }

</bundles_post_ra>
